<compile_context>
chip_gen: v7x
topology: tpu7x:2x2x1
jax: 0.10.0
libtpu: 0.0.40
codegen_flags: <defaults>
</compile_context>

<pallas_src>
import functools

import jax
import jax.numpy as jnp
from jax.experimental import pallas as pl
from jax.experimental.pallas import tpu as pltpu


# ---------------------------------------------------------------------------
# Fused kernel: BiLSTM + attention pooling + self-attention + conv + FC
# ---------------------------------------------------------------------------

def c_bla_kernel(x_ref, wih_ref, bih_ref, whh_ref, wproj_ref, bproj_ref,
                 wconv_ref, bconv_ref, wfc_ref, bfc_ref, o_ref,
                 lstm_scr, xpad_scr):
    """One batch tile end-to-end.

    x_ref     : (Bt, T, D)       input tile
    wih_ref   : (D, 8H)          [W_ih_f^T | W_ih_b^T]   (gate order i,f,g,o per dir)
    bih_ref   : (1, 8H)          [b_ih_f + b_hh_f | b_ih_b + b_hh_b]
    whh_ref   : (H, 8H)          [W_hh_f^T | W_hh_b^T]
    wproj_ref : (2H, 6H+1)       [W_q^T | W_k^T | W_v^T | W_attn^T]
    bproj_ref : (1, 6H+1)
    wconv_ref : (6, D, 384)      3 conv branches placed into one 6-tap window
    bconv_ref : (1, 384)
    wfc_ref   : (fc_in, C), bfc_ref: (1, C)
    o_ref     : (Bt, 1, C)       logits
    lstm_scr  : (Bt, T, 2H)      VMEM-resident BiLSTM output sequence
    xpad_scr  : (Bt, Tp, D)      VMEM zero-padded conv window (Tp = Lp + 5)
    """
    Bt, T, D = x_ref.shape
    H = wih_ref.shape[1] // 8
    H4 = 4 * H
    D2 = 2 * H
    Tp = xpad_scr.shape[1]
    Lp = Tp - 5                  # padded (multiple of 8) conv positions
    L = T + 1                    # true conv output length (k=2,4,6, pad=k//2)
    Cconv = wconv_ref.shape[2]
    C = o_ref.shape[2]

    x = x_ref[...]                                                    # (Bt, T, D)

    # -------- BiLSTM: both directions' input projections in ONE matmul --------
    if Bt == 1:
        xt = x.reshape(T, D)                                          # time-major rows
    else:
        xt = jnp.transpose(x, (1, 0, 2)).reshape(T * Bt, D)
    xp = jnp.dot(xt, wih_ref[...],
                 preferred_element_type=jnp.float32) + bih_ref[...]   # (T*Bt, 8H)
    # xp[:, 0:4H] = fwd gate pre-activations, xp[:, 4H:8H] = bwd gate pre-activations.

    whh = whh_ref[...]                                                # (H, 8H)

    h_st = jnp.zeros((2 * Bt, H), jnp.float32)   # rows [0:Bt] = fwd, [Bt:2Bt] = bwd
    c_st = jnp.zeros((2 * Bt, H), jnp.float32)

    # Fully-unrolled recurrence: one stacked matmul + one activation pass per step.
    for t in range(T):
        rt = T - 1 - t
        recur = jnp.dot(h_st, whh, preferred_element_type=jnp.float32)  # (2Bt, 8H)
        g_f = recur[0:Bt, 0:H4] + xp[t * Bt:(t + 1) * Bt, 0:H4]
        g_b = recur[Bt:2 * Bt, H4:2 * H4] + xp[rt * Bt:(rt + 1) * Bt, H4:2 * H4]
        g = jnp.concatenate([g_f, g_b], axis=0)            # (2Bt, 4H), order i,f,g,o
        i = jax.nn.sigmoid(g[:, 0:H])
        f = jax.nn.sigmoid(g[:, H:2 * H])
        gg = jnp.tanh(g[:, 2 * H:3 * H])
        o = jax.nn.sigmoid(g[:, 3 * H:4 * H])
        c_st = f * c_st + i * gg
        h_st = o * jnp.tanh(c_st)
        # fwd hidden -> time t, lanes [0:H); bwd hidden -> time rt, lanes [H:2H).
        lstm_scr[:, pl.ds(t, 1), pl.ds(0, H)] = h_st[0:Bt].reshape(Bt, 1, H)
        lstm_scr[:, pl.ds(rt, 1), pl.ds(H, H)] = h_st[Bt:2 * Bt].reshape(Bt, 1, H)

    lstm = lstm_scr[...]                                              # (Bt, T, 2H)

    # -------- fused Q | K | V | attention-score projection (one matmul) --------
    proj = (jnp.dot(lstm.reshape(Bt * T, D2), wproj_ref[...],
                    preferred_element_type=jnp.float32)
            + bproj_ref[...]).reshape(Bt, T, 3 * D2 + 1)
    q = proj[:, :, 0:D2]
    k = proj[:, :, D2:2 * D2]
    v = proj[:, :, 2 * D2:3 * D2]
    scores = proj[:, :, 3 * D2:3 * D2 + 1]                            # (Bt, T, 1)

    # -------- BiLSTM attention pooling: softmax over time, weighted sum --------
    scores = scores - jnp.max(scores, axis=1, keepdims=True)
    e = jnp.exp(scores)
    attn_w = e / jnp.sum(e, axis=1, keepdims=True)
    lstm_features = jnp.sum(lstm * attn_w, axis=1)                    # (Bt, 2H)

    # -------- Self attention: softmax(Q K^T) V (unscaled, as reference), max over T
    # TODO(synk): flash-style key tiling for production T (full (Bt,T,T) held here).
    s = jnp.einsum('bqd,bkd->bqk', q, k, preferred_element_type=jnp.float32)
    s = s - jnp.max(s, axis=-1, keepdims=True)
    es = jnp.exp(s)
    p = es / jnp.sum(es, axis=-1, keepdims=True)
    attn_out = jnp.einsum('bqk,bkd->bqd', p, v, preferred_element_type=jnp.float32)
    attention_features = jnp.max(attn_out, axis=1)                    # (Bt, 2H)

    # -------- Conv1d(k=2,4,6) + ReLU + max-over-time: 6 accumulated matmuls -----
    # Zero-padded window built in VMEM from the already-resident x (no HBM pad).
    xpad_scr[...] = jnp.zeros_like(xpad_scr)
    xpad_scr[:, pl.ds(3, T), :] = x
    acc = jnp.zeros((Bt * Lp, Cconv), jnp.float32)
    for j in range(6):
        win = xpad_scr[:, pl.ds(j, Lp), :].reshape(Bt * Lp, D)
        acc = acc + jnp.dot(win, wconv_ref[j], preferred_element_type=jnp.float32)
    acc = jnp.maximum(acc + bconv_ref[...], 0.0).reshape(Bt, Lp, Cconv)
    pos = jax.lax.broadcasted_iota(jnp.int32, (1, Lp, 1), 1)
    acc = jnp.where(pos < L, acc, 0.0)        # relu >= 0, so 0-masking padded rows is safe
    conv_features = jnp.max(acc, axis=1)                              # (Bt, 3*128)

    # -------- Final FC --------
    combined = jnp.concatenate(
        [lstm_features, conv_features, attention_features], axis=-1)
    logits = (jnp.dot(combined, wfc_ref[...], preferred_element_type=jnp.float32)
              + bfc_ref[...])
    o_ref[...] = logits.reshape(Bt, 1, C).astype(o_ref.dtype)


# ---------------------------------------------------------------------------
# Forward pass wrapper
# ---------------------------------------------------------------------------

@functools.partial(jax.jit, static_argnames=("batch_tile",))
def c_bla_forward(x, p, *, batch_tile=1):
    B, T, D = x.shape
    H = p["w_hh_f"].shape[1]
    D2 = 2 * H
    Bt = batch_tile
    assert B % Bt == 0
    f32 = jnp.float32

    # BiLSTM weights: columns [fwd 4H | bwd 4H]; bias = b_ih + b_hh per direction.
    w_ih = jnp.concatenate([p["w_ih_f"].T, p["w_ih_b"].T], axis=1)            # (D, 8H)
    b_ih = jnp.concatenate([p["b_ih_f"] + p["b_hh_f"],
                            p["b_ih_b"] + p["b_hh_b"]]).reshape(1, 8 * H)
    w_hh = jnp.concatenate([p["w_hh_f"].T, p["w_hh_b"].T], axis=1)            # (H, 8H)

    # Q | K | V | attention-score column in one weight matrix.
    w_proj = jnp.concatenate(
        [p["w_q"].T, p["w_k"].T, p["w_v"].T, p["w_attn"].T], axis=1)          # (2H, 6H+1)
    b_proj = jnp.concatenate(
        [p["b_q"], p["b_k"], p["b_v"], p["b_attn"]]).reshape(1, 3 * D2 + 1)

    # Conv branches (k=2,4,6 with padding k//2) as taps of one shared 6-wide window.
    def place(wk, K):
        pk = K // 2
        w_t = jnp.transpose(wk, (2, 1, 0)).astype(f32)                        # (K, D, Cout)
        return jnp.zeros((6, D, wk.shape[0]), f32).at[3 - pk:3 - pk + K].set(w_t)

    w_conv = jnp.concatenate([place(p["w_conv1"], 2),
                              place(p["w_conv2"], 4),
                              place(p["w_conv3"], 6)], axis=2)                # (6, D, 384)
    b_conv = jnp.concatenate(
        [p["b_conv1"], p["b_conv2"], p["b_conv3"]]).reshape(1, -1)

    w_fc = p["w_fc"].T                                                        # (fc_in, C)
    b_fc = p["b_fc"].reshape(1, -1)
    C = w_fc.shape[1]
    Cconv = w_conv.shape[2]

    L = T + 1
    Lp = ((L + 7) // 8) * 8
    Tp = Lp + 5

    def const_spec(shape):
        shape = tuple(shape)
        return pl.BlockSpec(shape, lambda b, _n=len(shape): (0,) * _n)

    out = pl.pallas_call(
        c_bla_kernel,
        out_shape=jax.ShapeDtypeStruct((B, 1, C), f32),
        grid=(B // Bt,),
        in_specs=[pl.BlockSpec((Bt, T, D), lambda b: (b, 0, 0)),
                  const_spec((D, 8 * H)),
                  const_spec((1, 8 * H)),
                  const_spec((H, 8 * H)),
                  const_spec((D2, 3 * D2 + 1)),
                  const_spec((1, 3 * D2 + 1)),
                  const_spec((6, D, Cconv)),
                  const_spec((1, Cconv)),
                  const_spec((w_fc.shape[0], C)),
                  const_spec((1, C))],
        out_specs=pl.BlockSpec((Bt, 1, C), lambda b: (b, 0, 0)),
        scratch_shapes=[pltpu.VMEM((Bt, T, 2 * H), f32),   # BiLSTM output sequence
                        pltpu.VMEM((Bt, Tp, D), f32)],     # padded conv window
        compiler_params=pltpu.CompilerParams(
            dimension_semantics=("parallel",)),            # shards over v7x's 2 TCs
    )(x.astype(f32), w_ih, b_ih, w_hh, w_proj, b_proj,
      w_conv, b_conv, w_fc, b_fc)
    return out[:, 0, :]


# ---------------------------------------------------------------------------
# Deterministic parameter init (synthetic — no checkpoint load)
# ---------------------------------------------------------------------------

def init_params(key, input_dim, hidden_dim, num_classes):
    H, D = hidden_dim, input_dim
    D2 = 2 * H
    conv_ch = 128
    fc_in = D2 + 3 * conv_ch + D2
    ks = jax.random.split(key, 24)

    def w(k, shape, scale=0.1):
        return (scale * jax.random.normal(k, shape)).astype(jnp.float32)

    return dict(
        # LSTM forward direction (PyTorch shapes, gate order i,f,g,o)
        w_ih_f=w(ks[0], (4 * H, D)), w_hh_f=w(ks[1], (4 * H, H)),
        b_ih_f=w(ks[2], (4 * H,)), b_hh_f=w(ks[3], (4 * H,)),
        # LSTM reverse direction
        w_ih_b=w(ks[4], (4 * H, D)), w_hh_b=w(ks[5], (4 * H, H)),
        b_ih_b=w(ks[6], (4 * H,)), b_hh_b=w(ks[7], (4 * H,)),
        # BiLSTM attention: Linear(2H, 1)
        w_attn=w(ks[8], (1, D2)), b_attn=w(ks[9], (1,)),
        # Conv1d(D, 128, k) for k = 2, 4, 6
        w_conv1=w(ks[10], (conv_ch, D, 2)), b_conv1=w(ks[11], (conv_ch,)),
        w_conv2=w(ks[12], (conv_ch, D, 4)), b_conv2=w(ks[13], (conv_ch,)),
        w_conv3=w(ks[14], (conv_ch, D, 6)), b_conv3=w(ks[15], (conv_ch,)),
        # Self attention: Linear(2H, 2H) x3
        w_q=w(ks[16], (D2, D2)), b_q=w(ks[17], (D2,)),
        w_k=w(ks[18], (D2, D2)), b_k=w(ks[19], (D2,)),
        w_v=w(ks[20], (D2, D2)), b_v=w(ks[21], (D2,)),
        # Final FC: Linear(2H + 384 + 2H, num_classes)
        w_fc=w(ks[22], (num_classes, fc_in)), b_fc=w(ks[23], (num_classes,)),
    )


if __name__ == "__main__":
    B, T = 2, 8
    input_dim, hidden_dim, num_classes = 16, 32, 3   # H=32 -> 4H = 128-lane aligned

    key = jax.random.PRNGKey(0)
    kx, kp = jax.random.split(key)
    x = jax.random.normal(kx, (B, T, input_dim), dtype=jnp.float32)
    params = init_params(kp, input_dim, hidden_dim, num_classes)

    out = c_bla_forward(x, params, batch_tile=1)
    out = jax.block_until_ready(out)
    assert out.shape == (B, num_classes)
    assert bool(jnp.all(jnp.isfinite(out)))
    print("KERNEL_OK")
</pallas_src>

<mosaic_0001>
module attributes {stable_mosaic.version = 11 : i64} {
  func.func @c_bla_kernel(%arg0: i32, %arg1: memref<1x8x16xf32, #tpu.memory_space<vmem>>, %arg2: memref<16x256xf32, #tpu.memory_space<vmem>>, %arg3: memref<1x256xf32, #tpu.memory_space<vmem>>, %arg4: memref<32x256xf32, #tpu.memory_space<vmem>>, %arg5: memref<64x193xf32, #tpu.memory_space<vmem>>, %arg6: memref<1x193xf32, #tpu.memory_space<vmem>>, %arg7: memref<6x16x384xf32, #tpu.memory_space<vmem>>, %arg8: memref<1x384xf32, #tpu.memory_space<vmem>>, %arg9: memref<512x3xf32, #tpu.memory_space<vmem>>, %arg10: memref<1x3xf32, #tpu.memory_space<vmem>>, %arg11: memref<1x1x3xf32, #tpu.memory_space<vmem>>, %arg12: memref<1x8x64xf32, #tpu.memory_space<vmem>>, %arg13: memref<1x21x16xf32, #tpu.memory_space<vmem>>) attributes {dimension_semantics = [#tpu.dimension_semantics<parallel>], iteration_bounds = array<i64: 2>, scalar_prefetch = 0 : i64, scratch_operands = 2 : i64, tpu.core_type = #tpu.core_type<tc>, window_params = [{transform_indices = @transform_0, window_bounds = array<i64: 1, 8, 16>}, {pipeline_mode = #tpu.pipeline_mode<synchronous>, transform_indices = @transform_1, window_bounds = array<i64: 16, 256>}, {pipeline_mode = #tpu.pipeline_mode<synchronous>, transform_indices = @transform_2, window_bounds = array<i64: 1, 256>}, {pipeline_mode = #tpu.pipeline_mode<synchronous>, transform_indices = @transform_3, window_bounds = array<i64: 32, 256>}, {pipeline_mode = #tpu.pipeline_mode<synchronous>, transform_indices = @transform_4, window_bounds = array<i64: 64, 193>}, {pipeline_mode = #tpu.pipeline_mode<synchronous>, transform_indices = @transform_5, window_bounds = array<i64: 1, 193>}, {pipeline_mode = #tpu.pipeline_mode<synchronous>, transform_indices = @transform_6, window_bounds = array<i64: 6, 16, 384>}, {pipeline_mode = #tpu.pipeline_mode<synchronous>, transform_indices = @transform_7, window_bounds = array<i64: 1, 384>}, {pipeline_mode = #tpu.pipeline_mode<synchronous>, transform_indices = @transform_8, window_bounds = array<i64: 512, 3>}, {pipeline_mode = #tpu.pipeline_mode<synchronous>, transform_indices = @transform_9, window_bounds = array<i64: 1, 3>}, {transform_indices = @transform_10, window_bounds = array<i64: 1, 1, 3>}]} {
    %c0 = arith.constant 0 : index
    %c0_0 = arith.constant 0 : index
    %c0_1 = arith.constant 0 : index
    %0 = vector.load %arg1[%c0, %c0_0, %c0_1] : memref<1x8x16xf32, #tpu.memory_space<vmem>>, vector<1x8x16xf32>
    %1 = vector.shape_cast %0 : vector<1x8x16xf32> to vector<8x16xf32>
    %c0_2 = arith.constant 0 : index
    %c0_3 = arith.constant 0 : index
    %2 = vector.load %arg2[%c0_2, %c0_3] : memref<16x256xf32, #tpu.memory_space<vmem>>, vector<16x256xf32>
    %cst = arith.constant dense<0.000000e+00> : vector<8x256xf32>
    %3 = tpu.matmul %1, %2, %cst {dimension_numbers = #tpu.dot_dimension_numbers<[1], [0], [0], [1], [0, 0, 1, 1], [], []>} : vector<8x16xf32>, vector<16x256xf32>, vector<8x256xf32> -> vector<8x256xf32>
    %c0_4 = arith.constant 0 : index
    %c0_5 = arith.constant 0 : index
    %4 = vector.load %arg3[%c0_4, %c0_5] : memref<1x256xf32, #tpu.memory_space<vmem>>, vector<1x256xf32>
    %5 = vector.broadcast %4 : vector<1x256xf32> to vector<8x256xf32>
    %6 = arith.addf %3, %5 : vector<8x256xf32>
    %c0_6 = arith.constant 0 : index
    %c0_7 = arith.constant 0 : index
    %7 = vector.load %arg4[%c0_6, %c0_7] : memref<32x256xf32, #tpu.memory_space<vmem>>, vector<32x256xf32>
    %cst_8 = arith.constant 0.000000e+00 : f32
    %8 = vector.broadcast %cst_8 : f32 to vector<2x32xf32>
    %cst_9 = arith.constant 0.000000e+00 : f32
    %9 = vector.broadcast %cst_9 : f32 to vector<2x32xf32>
    %cst_10 = arith.constant dense<0.000000e+00> : vector<2x256xf32>
    %10 = tpu.matmul %8, %7, %cst_10 {dimension_numbers = #tpu.dot_dimension_numbers<[1], [0], [0], [1], [0, 0, 1, 1], [], []>} : vector<2x32xf32>, vector<32x256xf32>, vector<2x256xf32> -> vector<2x256xf32>
    %11 = vector.extract_strided_slice %10 {offsets = [0, 0], sizes = [1, 128], strides = [1, 1]} : vector<2x256xf32> to vector<1x128xf32>
    %12 = vector.extract_strided_slice %6 {offsets = [0, 0], sizes = [1, 128], strides = [1, 1]} : vector<8x256xf32> to vector<1x128xf32>
    %13 = arith.addf %11, %12 : vector<1x128xf32>
    %14 = vector.extract_strided_slice %10 {offsets = [1, 128], sizes = [1, 128], strides = [1, 1]} : vector<2x256xf32> to vector<1x128xf32>
    %15 = vector.extract_strided_slice %6 {offsets = [7, 128], sizes = [1, 128], strides = [1, 1]} : vector<8x256xf32> to vector<1x128xf32>
    %16 = arith.addf %14, %15 : vector<1x128xf32>
    %17 = tpu.concatenate %13, %16 in 0 : vector<1x128xf32>, vector<1x128xf32> -> vector<2x128xf32>
    %18 = vector.extract_strided_slice %17 {offsets = [0, 0], sizes = [2, 32], strides = [1, 1]} : vector<2x128xf32> to vector<2x32xf32>
    %19 = arith.negf %18 : vector<2x32xf32>
    %20 = math.exp %19 : vector<2x32xf32>
    %cst_11 = arith.constant 1.000000e+00 : f32
    %21 = vector.broadcast %cst_11 : f32 to vector<2x32xf32>
    %22 = arith.addf %21, %20 : vector<2x32xf32>
    %23 = arith.divf %21, %22 : vector<2x32xf32>
    %24 = vector.extract_strided_slice %17 {offsets = [0, 32], sizes = [2, 32], strides = [1, 1]} : vector<2x128xf32> to vector<2x32xf32>
    %25 = arith.negf %24 : vector<2x32xf32>
    %26 = math.exp %25 : vector<2x32xf32>
    %cst_12 = arith.constant 1.000000e+00 : f32
    %27 = vector.broadcast %cst_12 : f32 to vector<2x32xf32>
    %28 = arith.addf %27, %26 : vector<2x32xf32>
    %29 = arith.divf %27, %28 : vector<2x32xf32>
    %30 = vector.extract_strided_slice %17 {offsets = [0, 64], sizes = [2, 32], strides = [1, 1]} : vector<2x128xf32> to vector<2x32xf32>
    %31 = math.tanh %30 : vector<2x32xf32>
    %32 = vector.extract_strided_slice %17 {offsets = [0, 96], sizes = [2, 32], strides = [1, 1]} : vector<2x128xf32> to vector<2x32xf32>
    %33 = arith.negf %32 : vector<2x32xf32>
    %34 = math.exp %33 : vector<2x32xf32>
    %cst_13 = arith.constant 1.000000e+00 : f32
    %35 = vector.broadcast %cst_13 : f32 to vector<2x32xf32>
    %36 = arith.addf %35, %34 : vector<2x32xf32>
    %37 = arith.divf %35, %36 : vector<2x32xf32>
    %38 = arith.mulf %29, %9 : vector<2x32xf32>
    %39 = arith.mulf %23, %31 : vector<2x32xf32>
    %40 = arith.addf %38, %39 : vector<2x32xf32>
    %41 = math.tanh %40 : vector<2x32xf32>
    %42 = arith.mulf %37, %41 : vector<2x32xf32>
    %43 = vector.extract_strided_slice %42 {offsets = [0, 0], sizes = [1, 32], strides = [1, 1]} : vector<2x32xf32> to vector<1x32xf32>
    %44 = vector.shape_cast %43 : vector<1x32xf32> to vector<1x1x32xf32>
    %c0_14 = arith.constant 0 : index
    %c0_15 = arith.constant 0 : index
    %c0_16 = arith.constant 0 : index
    %45 = vector.load %arg12[%c0_14, %c0_15, %c0_16] : memref<1x8x64xf32, #tpu.memory_space<vmem>>, vector<1x1x32xf32>
    tpu.vector_store %arg12[%c0_14, %c0_15, %c0_16], %44 {strides = array<i32>} : memref<1x8x64xf32, #tpu.memory_space<vmem>>, vector<1x1x32xf32>,
    %46 = vector.extract_strided_slice %42 {offsets = [1, 0], sizes = [1, 32], strides = [1, 1]} : vector<2x32xf32> to vector<1x32xf32>
    %47 = vector.shape_cast %46 : vector<1x32xf32> to vector<1x1x32xf32>
    %c0_17 = arith.constant 0 : index
    %c7 = arith.constant 7 : index
    %c32 = arith.constant 32 : index
    %48 = vector.load %arg12[%c0_17, %c7, %c32] : memref<1x8x64xf32, #tpu.memory_space<vmem>>, vector<1x1x32xf32>
    tpu.vector_store %arg12[%c0_17, %c7, %c32], %47 {strides = array<i32>} : memref<1x8x64xf32, #tpu.memory_space<vmem>>, vector<1x1x32xf32>,
    %cst_18 = arith.constant dense<0.000000e+00> : vector<2x256xf32>
    %49 = tpu.matmul %42, %7, %cst_18 {dimension_numbers = #tpu.dot_dimension_numbers<[1], [0], [0], [1], [0, 0, 1, 1], [], []>} : vector<2x32xf32>, vector<32x256xf32>, vector<2x256xf32> -> vector<2x256xf32>
    %50 = vector.extract_strided_slice %49 {offsets = [0, 0], sizes = [1, 128], strides = [1, 1]} : vector<2x256xf32> to vector<1x128xf32>
    %51 = vector.extract_strided_slice %6 {offsets = [1, 0], sizes = [1, 128], strides = [1, 1]} : vector<8x256xf32> to vector<1x128xf32>
    %52 = arith.addf %50, %51 : vector<1x128xf32>
    %53 = vector.extract_strided_slice %49 {offsets = [1, 128], sizes = [1, 128], strides = [1, 1]} : vector<2x256xf32> to vector<1x128xf32>
    %54 = vector.extract_strided_slice %6 {offsets = [6, 128], sizes = [1, 128], strides = [1, 1]} : vector<8x256xf32> to vector<1x128xf32>
    %55 = arith.addf %53, %54 : vector<1x128xf32>
    %56 = tpu.concatenate %52, %55 in 0 : vector<1x128xf32>, vector<1x128xf32> -> vector<2x128xf32>
    %57 = vector.extract_strided_slice %56 {offsets = [0, 0], sizes = [2, 32], strides = [1, 1]} : vector<2x128xf32> to vector<2x32xf32>
    %58 = arith.negf %57 : vector<2x32xf32>
    %59 = math.exp %58 : vector<2x32xf32>
    %cst_19 = arith.constant 1.000000e+00 : f32
    %60 = vector.broadcast %cst_19 : f32 to vector<2x32xf32>
    %61 = arith.addf %60, %59 : vector<2x32xf32>
    %62 = arith.divf %60, %61 : vector<2x32xf32>
    %63 = vector.extract_strided_slice %56 {offsets = [0, 32], sizes = [2, 32], strides = [1, 1]} : vector<2x128xf32> to vector<2x32xf32>
    %64 = arith.negf %63 : vector<2x32xf32>
    %65 = math.exp %64 : vector<2x32xf32>
    %cst_20 = arith.constant 1.000000e+00 : f32
    %66 = vector.broadcast %cst_20 : f32 to vector<2x32xf32>
    %67 = arith.addf %66, %65 : vector<2x32xf32>
    %68 = arith.divf %66, %67 : vector<2x32xf32>
    %69 = vector.extract_strided_slice %56 {offsets = [0, 64], sizes = [2, 32], strides = [1, 1]} : vector<2x128xf32> to vector<2x32xf32>
    %70 = math.tanh %69 : vector<2x32xf32>
    %71 = vector.extract_strided_slice %56 {offsets = [0, 96], sizes = [2, 32], strides = [1, 1]} : vector<2x128xf32> to vector<2x32xf32>
    %72 = arith.negf %71 : vector<2x32xf32>
    %73 = math.exp %72 : vector<2x32xf32>
    %cst_21 = arith.constant 1.000000e+00 : f32
    %74 = vector.broadcast %cst_21 : f32 to vector<2x32xf32>
    %75 = arith.addf %74, %73 : vector<2x32xf32>
    %76 = arith.divf %74, %75 : vector<2x32xf32>
    %77 = arith.mulf %68, %40 : vector<2x32xf32>
    %78 = arith.mulf %62, %70 : vector<2x32xf32>
    %79 = arith.addf %77, %78 : vector<2x32xf32>
    %80 = math.tanh %79 : vector<2x32xf32>
    %81 = arith.mulf %76, %80 : vector<2x32xf32>
    %82 = vector.extract_strided_slice %81 {offsets = [0, 0], sizes = [1, 32], strides = [1, 1]} : vector<2x32xf32> to vector<1x32xf32>
    %83 = vector.shape_cast %82 : vector<1x32xf32> to vector<1x1x32xf32>
    %c0_22 = arith.constant 0 : index
    %c1 = arith.constant 1 : index
    %c0_23 = arith.constant 0 : index
    %84 = vector.load %arg12[%c0_22, %c1, %c0_23] : memref<1x8x64xf32, #tpu.memory_space<vmem>>, vector<1x1x32xf32>
    tpu.vector_store %arg12[%c0_22, %c1, %c0_23], %83 {strides = array<i32>} : memref<1x8x64xf32, #tpu.memory_space<vmem>>, vector<1x1x32xf32>,
    %85 = vector.extract_strided_slice %81 {offsets = [1, 0], sizes = [1, 32], strides = [1, 1]} : vector<2x32xf32> to vector<1x32xf32>
    %86 = vector.shape_cast %85 : vector<1x32xf32> to vector<1x1x32xf32>
    %c0_24 = arith.constant 0 : index
    %c6 = arith.constant 6 : index
    %c32_25 = arith.constant 32 : index
    %87 = vector.load %arg12[%c0_24, %c6, %c32_25] : memref<1x8x64xf32, #tpu.memory_space<vmem>>, vector<1x1x32xf32>
    tpu.vector_store %arg12[%c0_24, %c6, %c32_25], %86 {strides = array<i32>} : memref<1x8x64xf32, #tpu.memory_space<vmem>>, vector<1x1x32xf32>,
    %cst_26 = arith.constant dense<0.000000e+00> : vector<2x256xf32>
    %88 = tpu.matmul %81, %7, %cst_26 {dimension_numbers = #tpu.dot_dimension_numbers<[1], [0], [0], [1], [0, 0, 1, 1], [], []>} : vector<2x32xf32>, vector<32x256xf32>, vector<2x256xf32> -> vector<2x256xf32>
    %89 = vector.extract_strided_slice %88 {offsets = [0, 0], sizes = [1, 128], strides = [1, 1]} : vector<2x256xf32> to vector<1x128xf32>
    %90 = vector.extract_strided_slice %6 {offsets = [2, 0], sizes = [1, 128], strides = [1, 1]} : vector<8x256xf32> to vector<1x128xf32>
    %91 = arith.addf %89, %90 : vector<1x128xf32>
    %92 = vector.extract_strided_slice %88 {offsets = [1, 128], sizes = [1, 128], strides = [1, 1]} : vector<2x256xf32> to vector<1x128xf32>
    %93 = vector.extract_strided_slice %6 {offsets = [5, 128], sizes = [1, 128], strides = [1, 1]} : vector<8x256xf32> to vector<1x128xf32>
    %94 = arith.addf %92, %93 : vector<1x128xf32>
    %95 = tpu.concatenate %91, %94 in 0 : vector<1x128xf32>, vector<1x128xf32> -> vector<2x128xf32>
    %96 = vector.extract_strided_slice %95 {offsets = [0, 0], sizes = [2, 32], strides = [1, 1]} : vector<2x128xf32> to vector<2x32xf32>
    %97 = arith.negf %96 : vector<2x32xf32>
    %98 = math.exp %97 : vector<2x32xf32>
    %cst_27 = arith.constant 1.000000e+00 : f32
    %99 = vector.broadcast %cst_27 : f32 to vector<2x32xf32>
    %100 = arith.addf %99, %98 : vector<2x32xf32>
    %101 = arith.divf %99, %100 : vector<2x32xf32>
    %102 = vector.extract_strided_slice %95 {offsets = [0, 32], sizes = [2, 32], strides = [1, 1]} : vector<2x128xf32> to vector<2x32xf32>
    %103 = arith.negf %102 : vector<2x32xf32>
    %104 = math.exp %103 : vector<2x32xf32>
    %cst_28 = arith.constant 1.000000e+00 : f32
    %105 = vector.broadcast %cst_28 : f32 to vector<2x32xf32>
    %106 = arith.addf %105, %104 : vector<2x32xf32>
    %107 = arith.divf %105, %106 : vector<2x32xf32>
    %108 = vector.extract_strided_slice %95 {offsets = [0, 64], sizes = [2, 32], strides = [1, 1]} : vector<2x128xf32> to vector<2x32xf32>
    %109 = math.tanh %108 : vector<2x32xf32>
    %110 = vector.extract_strided_slice %95 {offsets = [0, 96], sizes = [2, 32], strides = [1, 1]} : vector<2x128xf32> to vector<2x32xf32>
    %111 = arith.negf %110 : vector<2x32xf32>
    %112 = math.exp %111 : vector<2x32xf32>
    %cst_29 = arith.constant 1.000000e+00 : f32
    %113 = vector.broadcast %cst_29 : f32 to vector<2x32xf32>
    %114 = arith.addf %113, %112 : vector<2x32xf32>
    %115 = arith.divf %113, %114 : vector<2x32xf32>
    %116 = arith.mulf %107, %79 : vector<2x32xf32>
    %117 = arith.mulf %101, %109 : vector<2x32xf32>
    %118 = arith.addf %116, %117 : vector<2x32xf32>
    %119 = math.tanh %118 : vector<2x32xf32>
    %120 = arith.mulf %115, %119 : vector<2x32xf32>
    %121 = vector.extract_strided_slice %120 {offsets = [0, 0], sizes = [1, 32], strides = [1, 1]} : vector<2x32xf32> to vector<1x32xf32>
    %122 = vector.shape_cast %121 : vector<1x32xf32> to vector<1x1x32xf32>
    %c0_30 = arith.constant 0 : index
    %c2 = arith.constant 2 : index
    %c0_31 = arith.constant 0 : index
    %123 = vector.load %arg12[%c0_30, %c2, %c0_31] : memref<1x8x64xf32, #tpu.memory_space<vmem>>, vector<1x1x32xf32>
    tpu.vector_store %arg12[%c0_30, %c2, %c0_31], %122 {strides = array<i32>} : memref<1x8x64xf32, #tpu.memory_space<vmem>>, vector<1x1x32xf32>,
    %124 = vector.extract_strided_slice %120 {offsets = [1, 0], sizes = [1, 32], strides = [1, 1]} : vector<2x32xf32> to vector<1x32xf32>
    %125 = vector.shape_cast %124 : vector<1x32xf32> to vector<1x1x32xf32>
    %c0_32 = arith.constant 0 : index
    %c5 = arith.constant 5 : index
    %c32_33 = arith.constant 32 : index
    %126 = vector.load %arg12[%c0_32, %c5, %c32_33] : memref<1x8x64xf32, #tpu.memory_space<vmem>>, vector<1x1x32xf32>
    tpu.vector_store %arg12[%c0_32, %c5, %c32_33], %125 {strides = array<i32>} : memref<1x8x64xf32, #tpu.memory_space<vmem>>, vector<1x1x32xf32>,
    %cst_34 = arith.constant dense<0.000000e+00> : vector<2x256xf32>
    %127 = tpu.matmul %120, %7, %cst_34 {dimension_numbers = #tpu.dot_dimension_numbers<[1], [0], [0], [1], [0, 0, 1, 1], [], []>} : vector<2x32xf32>, vector<32x256xf32>, vector<2x256xf32> -> vector<2x256xf32>
    %128 = vector.extract_strided_slice %127 {offsets = [0, 0], sizes = [1, 128], strides = [1, 1]} : vector<2x256xf32> to vector<1x128xf32>
    %129 = vector.extract_strided_slice %6 {offsets = [3, 0], sizes = [1, 128], strides = [1, 1]} : vector<8x256xf32> to vector<1x128xf32>
    %130 = arith.addf %128, %129 : vector<1x128xf32>
    %131 = vector.extract_strided_slice %127 {offsets = [1, 128], sizes = [1, 128], strides = [1, 1]} : vector<2x256xf32> to vector<1x128xf32>
    %132 = vector.extract_strided_slice %6 {offsets = [4, 128], sizes = [1, 128], strides = [1, 1]} : vector<8x256xf32> to vector<1x128xf32>
    %133 = arith.addf %131, %132 : vector<1x128xf32>
    %134 = tpu.concatenate %130, %133 in 0 : vector<1x128xf32>, vector<1x128xf32> -> vector<2x128xf32>
    %135 = vector.extract_strided_slice %134 {offsets = [0, 0], sizes = [2, 32], strides = [1, 1]} : vector<2x128xf32> to vector<2x32xf32>
    %136 = arith.negf %135 : vector<2x32xf32>
    %137 = math.exp %136 : vector<2x32xf32>
    %cst_35 = arith.constant 1.000000e+00 : f32
    %138 = vector.broadcast %cst_35 : f32 to vector<2x32xf32>
    %139 = arith.addf %138, %137 : vector<2x32xf32>
    %140 = arith.divf %138, %139 : vector<2x32xf32>
    %141 = vector.extract_strided_slice %134 {offsets = [0, 32], sizes = [2, 32], strides = [1, 1]} : vector<2x128xf32> to vector<2x32xf32>
    %142 = arith.negf %141 : vector<2x32xf32>
    %143 = math.exp %142 : vector<2x32xf32>
    %cst_36 = arith.constant 1.000000e+00 : f32
    %144 = vector.broadcast %cst_36 : f32 to vector<2x32xf32>
    %145 = arith.addf %144, %143 : vector<2x32xf32>
    %146 = arith.divf %144, %145 : vector<2x32xf32>
    %147 = vector.extract_strided_slice %134 {offsets = [0, 64], sizes = [2, 32], strides = [1, 1]} : vector<2x128xf32> to vector<2x32xf32>
    %148 = math.tanh %147 : vector<2x32xf32>
    %149 = vector.extract_strided_slice %134 {offsets = [0, 96], sizes = [2, 32], strides = [1, 1]} : vector<2x128xf32> to vector<2x32xf32>
    %150 = arith.negf %149 : vector<2x32xf32>
    %151 = math.exp %150 : vector<2x32xf32>
    %cst_37 = arith.constant 1.000000e+00 : f32
    %152 = vector.broadcast %cst_37 : f32 to vector<2x32xf32>
    %153 = arith.addf %152, %151 : vector<2x32xf32>
    %154 = arith.divf %152, %153 : vector<2x32xf32>
    %155 = arith.mulf %146, %118 : vector<2x32xf32>
    %156 = arith.mulf %140, %148 : vector<2x32xf32>
    %157 = arith.addf %155, %156 : vector<2x32xf32>
    %158 = math.tanh %157 : vector<2x32xf32>
    %159 = arith.mulf %154, %158 : vector<2x32xf32>
    %160 = vector.extract_strided_slice %159 {offsets = [0, 0], sizes = [1, 32], strides = [1, 1]} : vector<2x32xf32> to vector<1x32xf32>
    %161 = vector.shape_cast %160 : vector<1x32xf32> to vector<1x1x32xf32>
    %c0_38 = arith.constant 0 : index
    %c3 = arith.constant 3 : index
    %c0_39 = arith.constant 0 : index
    %162 = vector.load %arg12[%c0_38, %c3, %c0_39] : memref<1x8x64xf32, #tpu.memory_space<vmem>>, vector<1x1x32xf32>
    tpu.vector_store %arg12[%c0_38, %c3, %c0_39], %161 {strides = array<i32>} : memref<1x8x64xf32, #tpu.memory_space<vmem>>, vector<1x1x32xf32>,
    %163 = vector.extract_strided_slice %159 {offsets = [1, 0], sizes = [1, 32], strides = [1, 1]} : vector<2x32xf32> to vector<1x32xf32>
    %164 = vector.shape_cast %163 : vector<1x32xf32> to vector<1x1x32xf32>
    %c0_40 = arith.constant 0 : index
    %c4 = arith.constant 4 : index
    %c32_41 = arith.constant 32 : index
    %165 = vector.load %arg12[%c0_40, %c4, %c32_41] : memref<1x8x64xf32, #tpu.memory_space<vmem>>, vector<1x1x32xf32>
    tpu.vector_store %arg12[%c0_40, %c4, %c32_41], %164 {strides = array<i32>} : memref<1x8x64xf32, #tpu.memory_space<vmem>>, vector<1x1x32xf32>,
    %cst_42 = arith.constant dense<0.000000e+00> : vector<2x256xf32>
    %166 = tpu.matmul %159, %7, %cst_42 {dimension_numbers = #tpu.dot_dimension_numbers<[1], [0], [0], [1], [0, 0, 1, 1], [], []>} : vector<2x32xf32>, vector<32x256xf32>, vector<2x256xf32> -> vector<2x256xf32>
    %167 = vector.extract_strided_slice %166 {offsets = [0, 0], sizes = [1, 128], strides = [1, 1]} : vector<2x256xf32> to vector<1x128xf32>
    %168 = vector.extract_strided_slice %6 {offsets = [4, 0], sizes = [1, 128], strides = [1, 1]} : vector<8x256xf32> to vector<1x128xf32>
    %169 = arith.addf %167, %168 : vector<1x128xf32>
    %170 = vector.extract_strided_slice %166 {offsets = [1, 128], sizes = [1, 128], strides = [1, 1]} : vector<2x256xf32> to vector<1x128xf32>
    %171 = vector.extract_strided_slice %6 {offsets = [3, 128], sizes = [1, 128], strides = [1, 1]} : vector<8x256xf32> to vector<1x128xf32>
    %172 = arith.addf %170, %171 : vector<1x128xf32>
    %173 = tpu.concatenate %169, %172 in 0 : vector<1x128xf32>, vector<1x128xf32> -> vector<2x128xf32>
    %174 = vector.extract_strided_slice %173 {offsets = [0, 0], sizes = [2, 32], strides = [1, 1]} : vector<2x128xf32> to vector<2x32xf32>
    %175 = arith.negf %174 : vector<2x32xf32>
    %176 = math.exp %175 : vector<2x32xf32>
    %cst_43 = arith.constant 1.000000e+00 : f32
    %177 = vector.broadcast %cst_43 : f32 to vector<2x32xf32>
    %178 = arith.addf %177, %176 : vector<2x32xf32>
    %179 = arith.divf %177, %178 : vector<2x32xf32>
    %180 = vector.extract_strided_slice %173 {offsets = [0, 32], sizes = [2, 32], strides = [1, 1]} : vector<2x128xf32> to vector<2x32xf32>
    %181 = arith.negf %180 : vector<2x32xf32>
    %182 = math.exp %181 : vector<2x32xf32>
    %cst_44 = arith.constant 1.000000e+00 : f32
    %183 = vector.broadcast %cst_44 : f32 to vector<2x32xf32>
    %184 = arith.addf %183, %182 : vector<2x32xf32>
    %185 = arith.divf %183, %184 : vector<2x32xf32>
    %186 = vector.extract_strided_slice %173 {offsets = [0, 64], sizes = [2, 32], strides = [1, 1]} : vector<2x128xf32> to vector<2x32xf32>
    %187 = math.tanh %186 : vector<2x32xf32>
    %188 = vector.extract_strided_slice %173 {offsets = [0, 96], sizes = [2, 32], strides = [1, 1]} : vector<2x128xf32> to vector<2x32xf32>
    %189 = arith.negf %188 : vector<2x32xf32>
    %190 = math.exp %189 : vector<2x32xf32>
    %cst_45 = arith.constant 1.000000e+00 : f32
    %191 = vector.broadcast %cst_45 : f32 to vector<2x32xf32>
    %192 = arith.addf %191, %190 : vector<2x32xf32>
    %193 = arith.divf %191, %192 : vector<2x32xf32>
    %194 = arith.mulf %185, %157 : vector<2x32xf32>
    %195 = arith.mulf %179, %187 : vector<2x32xf32>
    %196 = arith.addf %194, %195 : vector<2x32xf32>
    %197 = math.tanh %196 : vector<2x32xf32>
    %198 = arith.mulf %193, %197 : vector<2x32xf32>
    %199 = vector.extract_strided_slice %198 {offsets = [0, 0], sizes = [1, 32], strides = [1, 1]} : vector<2x32xf32> to vector<1x32xf32>
    %200 = vector.shape_cast %199 : vector<1x32xf32> to vector<1x1x32xf32>
    %c0_46 = arith.constant 0 : index
    %c4_47 = arith.constant 4 : index
    %c0_48 = arith.constant 0 : index
    %201 = vector.load %arg12[%c0_46, %c4_47, %c0_48] : memref<1x8x64xf32, #tpu.memory_space<vmem>>, vector<1x1x32xf32>
    tpu.vector_store %arg12[%c0_46, %c4_47, %c0_48], %200 {strides = array<i32>} : memref<1x8x64xf32, #tpu.memory_space<vmem>>, vector<1x1x32xf32>,
    %202 = vector.extract_strided_slice %198 {offsets = [1, 0], sizes = [1, 32], strides = [1, 1]} : vector<2x32xf32> to vector<1x32xf32>
    %203 = vector.shape_cast %202 : vector<1x32xf32> to vector<1x1x32xf32>
    %c0_49 = arith.constant 0 : index
    %c3_50 = arith.constant 3 : index
    %c32_51 = arith.constant 32 : index
    %204 = vector.load %arg12[%c0_49, %c3_50, %c32_51] : memref<1x8x64xf32, #tpu.memory_space<vmem>>, vector<1x1x32xf32>
    tpu.vector_store %arg12[%c0_49, %c3_50, %c32_51], %203 {strides = array<i32>} : memref<1x8x64xf32, #tpu.memory_space<vmem>>, vector<1x1x32xf32>,
    %cst_52 = arith.constant dense<0.000000e+00> : vector<2x256xf32>
    %205 = tpu.matmul %198, %7, %cst_52 {dimension_numbers = #tpu.dot_dimension_numbers<[1], [0], [0], [1], [0, 0, 1, 1], [], []>} : vector<2x32xf32>, vector<32x256xf32>, vector<2x256xf32> -> vector<2x256xf32>
    %206 = vector.extract_strided_slice %205 {offsets = [0, 0], sizes = [1, 128], strides = [1, 1]} : vector<2x256xf32> to vector<1x128xf32>
    %207 = vector.extract_strided_slice %6 {offsets = [5, 0], sizes = [1, 128], strides = [1, 1]} : vector<8x256xf32> to vector<1x128xf32>
    %208 = arith.addf %206, %207 : vector<1x128xf32>
    %209 = vector.extract_strided_slice %205 {offsets = [1, 128], sizes = [1, 128], strides = [1, 1]} : vector<2x256xf32> to vector<1x128xf32>
    %210 = vector.extract_strided_slice %6 {offsets = [2, 128], sizes = [1, 128], strides = [1, 1]} : vector<8x256xf32> to vector<1x128xf32>
    %211 = arith.addf %209, %210 : vector<1x128xf32>
    %212 = tpu.concatenate %208, %211 in 0 : vector<1x128xf32>, vector<1x128xf32> -> vector<2x128xf32>
    %213 = vector.extract_strided_slice %212 {offsets = [0, 0], sizes = [2, 32], strides = [1, 1]} : vector<2x128xf32> to vector<2x32xf32>
    %214 = arith.negf %213 : vector<2x32xf32>
    %215 = math.exp %214 : vector<2x32xf32>
    %cst_53 = arith.constant 1.000000e+00 : f32
    %216 = vector.broadcast %cst_53 : f32 to vector<2x32xf32>
    %217 = arith.addf %216, %215 : vector<2x32xf32>
    %218 = arith.divf %216, %217 : vector<2x32xf32>
    %219 = vector.extract_strided_slice %212 {offsets = [0, 32], sizes = [2, 32], strides = [1, 1]} : vector<2x128xf32> to vector<2x32xf32>
    %220 = arith.negf %219 : vector<2x32xf32>
    %221 = math.exp %220 : vector<2x32xf32>
    %cst_54 = arith.constant 1.000000e+00 : f32
    %222 = vector.broadcast %cst_54 : f32 to vector<2x32xf32>
    %223 = arith.addf %222, %221 : vector<2x32xf32>
    %224 = arith.divf %222, %223 : vector<2x32xf32>
    %225 = vector.extract_strided_slice %212 {offsets = [0, 64], sizes = [2, 32], strides = [1, 1]} : vector<2x128xf32> to vector<2x32xf32>
    %226 = math.tanh %225 : vector<2x32xf32>
    %227 = vector.extract_strided_slice %212 {offsets = [0, 96], sizes = [2, 32], strides = [1, 1]} : vector<2x128xf32> to vector<2x32xf32>
    %228 = arith.negf %227 : vector<2x32xf32>
    %229 = math.exp %228 : vector<2x32xf32>
    %cst_55 = arith.constant 1.000000e+00 : f32
    %230 = vector.broadcast %cst_55 : f32 to vector<2x32xf32>
    %231 = arith.addf %230, %229 : vector<2x32xf32>
    %232 = arith.divf %230, %231 : vector<2x32xf32>
    %233 = arith.mulf %224, %196 : vector<2x32xf32>
    %234 = arith.mulf %218, %226 : vector<2x32xf32>
    %235 = arith.addf %233, %234 : vector<2x32xf32>
    %236 = math.tanh %235 : vector<2x32xf32>
    %237 = arith.mulf %232, %236 : vector<2x32xf32>
    %238 = vector.extract_strided_slice %237 {offsets = [0, 0], sizes = [1, 32], strides = [1, 1]} : vector<2x32xf32> to vector<1x32xf32>
    %239 = vector.shape_cast %238 : vector<1x32xf32> to vector<1x1x32xf32>
    %c0_56 = arith.constant 0 : index
    %c5_57 = arith.constant 5 : index
    %c0_58 = arith.constant 0 : index
    %240 = vector.load %arg12[%c0_56, %c5_57, %c0_58] : memref<1x8x64xf32, #tpu.memory_space<vmem>>, vector<1x1x32xf32>
    tpu.vector_store %arg12[%c0_56, %c5_57, %c0_58], %239 {strides = array<i32>} : memref<1x8x64xf32, #tpu.memory_space<vmem>>, vector<1x1x32xf32>,
    %241 = vector.extract_strided_slice %237 {offsets = [1, 0], sizes = [1, 32], strides = [1, 1]} : vector<2x32xf32> to vector<1x32xf32>
    %242 = vector.shape_cast %241 : vector<1x32xf32> to vector<1x1x32xf32>
    %c0_59 = arith.constant 0 : index
    %c2_60 = arith.constant 2 : index
    %c32_61 = arith.constant 32 : index
    %243 = vector.load %arg12[%c0_59, %c2_60, %c32_61] : memref<1x8x64xf32, #tpu.memory_space<vmem>>, vector<1x1x32xf32>
    tpu.vector_store %arg12[%c0_59, %c2_60, %c32_61], %242 {strides = array<i32>} : memref<1x8x64xf32, #tpu.memory_space<vmem>>, vector<1x1x32xf32>,
    %cst_62 = arith.constant dense<0.000000e+00> : vector<2x256xf32>
    %244 = tpu.matmul %237, %7, %cst_62 {dimension_numbers = #tpu.dot_dimension_numbers<[1], [0], [0], [1], [0, 0, 1, 1], [], []>} : vector<2x32xf32>, vector<32x256xf32>, vector<2x256xf32> -> vector<2x256xf32>
    %245 = vector.extract_strided_slice %244 {offsets = [0, 0], sizes = [1, 128], strides = [1, 1]} : vector<2x256xf32> to vector<1x128xf32>
    %246 = vector.extract_strided_slice %6 {offsets = [6, 0], sizes = [1, 128], strides = [1, 1]} : vector<8x256xf32> to vector<1x128xf32>
    %247 = arith.addf %245, %246 : vector<1x128xf32>
    %248 = vector.extract_strided_slice %244 {offsets = [1, 128], sizes = [1, 128], strides = [1, 1]} : vector<2x256xf32> to vector<1x128xf32>
    %249 = vector.extract_strided_slice %6 {offsets = [1, 128], sizes = [1, 128], strides = [1, 1]} : vector<8x256xf32> to vector<1x128xf32>
    %250 = arith.addf %248, %249 : vector<1x128xf32>
    %251 = tpu.concatenate %247, %250 in 0 : vector<1x128xf32>, vector<1x128xf32> -> vector<2x128xf32>
    %252 = vector.extract_strided_slice %251 {offsets = [0, 0], sizes = [2, 32], strides = [1, 1]} : vector<2x128xf32> to vector<2x32xf32>
    %253 = arith.negf %252 : vector<2x32xf32>
    %254 = math.exp %253 : vector<2x32xf32>
    %cst_63 = arith.constant 1.000000e+00 : f32
    %255 = vector.broadcast %cst_63 : f32 to vector<2x32xf32>
    %256 = arith.addf %255, %254 : vector<2x32xf32>
    %257 = arith.divf %255, %256 : vector<2x32xf32>
    %258 = vector.extract_strided_slice %251 {offsets = [0, 32], sizes = [2, 32], strides = [1, 1]} : vector<2x128xf32> to vector<2x32xf32>
    %259 = arith.negf %258 : vector<2x32xf32>
    %260 = math.exp %259 : vector<2x32xf32>
    %cst_64 = arith.constant 1.000000e+00 : f32
    %261 = vector.broadcast %cst_64 : f32 to vector<2x32xf32>
    %262 = arith.addf %261, %260 : vector<2x32xf32>
    %263 = arith.divf %261, %262 : vector<2x32xf32>
    %264 = vector.extract_strided_slice %251 {offsets = [0, 64], sizes = [2, 32], strides = [1, 1]} : vector<2x128xf32> to vector<2x32xf32>
    %265 = math.tanh %264 : vector<2x32xf32>
    %266 = vector.extract_strided_slice %251 {offsets = [0, 96], sizes = [2, 32], strides = [1, 1]} : vector<2x128xf32> to vector<2x32xf32>
    %267 = arith.negf %266 : vector<2x32xf32>
    %268 = math.exp %267 : vector<2x32xf32>
    %cst_65 = arith.constant 1.000000e+00 : f32
    %269 = vector.broadcast %cst_65 : f32 to vector<2x32xf32>
    %270 = arith.addf %269, %268 : vector<2x32xf32>
    %271 = arith.divf %269, %270 : vector<2x32xf32>
    %272 = arith.mulf %263, %235 : vector<2x32xf32>
    %273 = arith.mulf %257, %265 : vector<2x32xf32>
    %274 = arith.addf %272, %273 : vector<2x32xf32>
    %275 = math.tanh %274 : vector<2x32xf32>
    %276 = arith.mulf %271, %275 : vector<2x32xf32>
    %277 = vector.extract_strided_slice %276 {offsets = [0, 0], sizes = [1, 32], strides = [1, 1]} : vector<2x32xf32> to vector<1x32xf32>
    %278 = vector.shape_cast %277 : vector<1x32xf32> to vector<1x1x32xf32>
    %c0_66 = arith.constant 0 : index
    %c6_67 = arith.constant 6 : index
    %c0_68 = arith.constant 0 : index
    %279 = vector.load %arg12[%c0_66, %c6_67, %c0_68] : memref<1x8x64xf32, #tpu.memory_space<vmem>>, vector<1x1x32xf32>
    tpu.vector_store %arg12[%c0_66, %c6_67, %c0_68], %278 {strides = array<i32>} : memref<1x8x64xf32, #tpu.memory_space<vmem>>, vector<1x1x32xf32>,
    %280 = vector.extract_strided_slice %276 {offsets = [1, 0], sizes = [1, 32], strides = [1, 1]} : vector<2x32xf32> to vector<1x32xf32>
    %281 = vector.shape_cast %280 : vector<1x32xf32> to vector<1x1x32xf32>
    %c0_69 = arith.constant 0 : index
    %c1_70 = arith.constant 1 : index
    %c32_71 = arith.constant 32 : index
    %282 = vector.load %arg12[%c0_69, %c1_70, %c32_71] : memref<1x8x64xf32, #tpu.memory_space<vmem>>, vector<1x1x32xf32>
    tpu.vector_store %arg12[%c0_69, %c1_70, %c32_71], %281 {strides = array<i32>} : memref<1x8x64xf32, #tpu.memory_space<vmem>>, vector<1x1x32xf32>,
    %cst_72 = arith.constant dense<0.000000e+00> : vector<2x256xf32>
    %283 = tpu.matmul %276, %7, %cst_72 {dimension_numbers = #tpu.dot_dimension_numbers<[1], [0], [0], [1], [0, 0, 1, 1], [], []>} : vector<2x32xf32>, vector<32x256xf32>, vector<2x256xf32> -> vector<2x256xf32>
    %284 = vector.extract_strided_slice %283 {offsets = [0, 0], sizes = [1, 128], strides = [1, 1]} : vector<2x256xf32> to vector<1x128xf32>
    %285 = vector.extract_strided_slice %6 {offsets = [7, 0], sizes = [1, 128], strides = [1, 1]} : vector<8x256xf32> to vector<1x128xf32>
    %286 = arith.addf %284, %285 : vector<1x128xf32>
    %287 = vector.extract_strided_slice %283 {offsets = [1, 128], sizes = [1, 128], strides = [1, 1]} : vector<2x256xf32> to vector<1x128xf32>
    %288 = vector.extract_strided_slice %6 {offsets = [0, 128], sizes = [1, 128], strides = [1, 1]} : vector<8x256xf32> to vector<1x128xf32>
    %289 = arith.addf %287, %288 : vector<1x128xf32>
    %290 = tpu.concatenate %286, %289 in 0 : vector<1x128xf32>, vector<1x128xf32> -> vector<2x128xf32>
    %291 = vector.extract_strided_slice %290 {offsets = [0, 0], sizes = [2, 32], strides = [1, 1]} : vector<2x128xf32> to vector<2x32xf32>
    %292 = arith.negf %291 : vector<2x32xf32>
    %293 = math.exp %292 : vector<2x32xf32>
    %cst_73 = arith.constant 1.000000e+00 : f32
    %294 = vector.broadcast %cst_73 : f32 to vector<2x32xf32>
    %295 = arith.addf %294, %293 : vector<2x32xf32>
    %296 = arith.divf %294, %295 : vector<2x32xf32>
    %297 = vector.extract_strided_slice %290 {offsets = [0, 32], sizes = [2, 32], strides = [1, 1]} : vector<2x128xf32> to vector<2x32xf32>
    %298 = arith.negf %297 : vector<2x32xf32>
    %299 = math.exp %298 : vector<2x32xf32>
    %cst_74 = arith.constant 1.000000e+00 : f32
    %300 = vector.broadcast %cst_74 : f32 to vector<2x32xf32>
    %301 = arith.addf %300, %299 : vector<2x32xf32>
    %302 = arith.divf %300, %301 : vector<2x32xf32>
    %303 = vector.extract_strided_slice %290 {offsets = [0, 64], sizes = [2, 32], strides = [1, 1]} : vector<2x128xf32> to vector<2x32xf32>
    %304 = math.tanh %303 : vector<2x32xf32>
    %305 = vector.extract_strided_slice %290 {offsets = [0, 96], sizes = [2, 32], strides = [1, 1]} : vector<2x128xf32> to vector<2x32xf32>
    %306 = arith.negf %305 : vector<2x32xf32>
    %307 = math.exp %306 : vector<2x32xf32>
    %cst_75 = arith.constant 1.000000e+00 : f32
    %308 = vector.broadcast %cst_75 : f32 to vector<2x32xf32>
    %309 = arith.addf %308, %307 : vector<2x32xf32>
    %310 = arith.divf %308, %309 : vector<2x32xf32>
    %311 = arith.mulf %302, %274 : vector<2x32xf32>
    %312 = arith.mulf %296, %304 : vector<2x32xf32>
    %313 = arith.addf %311, %312 : vector<2x32xf32>
    %314 = math.tanh %313 : vector<2x32xf32>
    %315 = arith.mulf %310, %314 : vector<2x32xf32>
    %316 = vector.extract_strided_slice %315 {offsets = [0, 0], sizes = [1, 32], strides = [1, 1]} : vector<2x32xf32> to vector<1x32xf32>
    %317 = vector.shape_cast %316 : vector<1x32xf32> to vector<1x1x32xf32>
    %c0_76 = arith.constant 0 : index
    %c7_77 = arith.constant 7 : index
    %c0_78 = arith.constant 0 : index
    %318 = vector.load %arg12[%c0_76, %c7_77, %c0_78] : memref<1x8x64xf32, #tpu.memory_space<vmem>>, vector<1x1x32xf32>
    tpu.vector_store %arg12[%c0_76, %c7_77, %c0_78], %317 {strides = array<i32>} : memref<1x8x64xf32, #tpu.memory_space<vmem>>, vector<1x1x32xf32>,
    %319 = vector.extract_strided_slice %315 {offsets = [1, 0], sizes = [1, 32], strides = [1, 1]} : vector<2x32xf32> to vector<1x32xf32>
    %320 = vector.shape_cast %319 : vector<1x32xf32> to vector<1x1x32xf32>
    %c0_79 = arith.constant 0 : index
    %c0_80 = arith.constant 0 : index
    %c32_81 = arith.constant 32 : index
    %321 = vector.load %arg12[%c0_79, %c0_80, %c32_81] : memref<1x8x64xf32, #tpu.memory_space<vmem>>, vector<1x1x32xf32>
    tpu.vector_store %arg12[%c0_79, %c0_80, %c32_81], %320 {strides = array<i32>} : memref<1x8x64xf32, #tpu.memory_space<vmem>>, vector<1x1x32xf32>,
    %c0_82 = arith.constant 0 : index
    %c0_83 = arith.constant 0 : index
    %c0_84 = arith.constant 0 : index
    %322 = vector.load %arg12[%c0_82, %c0_83, %c0_84] : memref<1x8x64xf32, #tpu.memory_space<vmem>>, vector<1x8x64xf32>
    %323 = vector.shape_cast %322 : vector<1x8x64xf32> to vector<8x64xf32>
    %c0_85 = arith.constant 0 : index
    %c0_86 = arith.constant 0 : index
    %324 = vector.load %arg5[%c0_85, %c0_86] : memref<64x193xf32, #tpu.memory_space<vmem>>, vector<64x193xf32>
    %cst_87 = arith.constant dense<0.000000e+00> : vector<8x193xf32>
    %325 = tpu.matmul %323, %324, %cst_87 {dimension_numbers = #tpu.dot_dimension_numbers<[1], [0], [0], [1], [0, 0, 1, 1], [], []>} : vector<8x64xf32>, vector<64x193xf32>, vector<8x193xf32> -> vector<8x193xf32>
    %c0_88 = arith.constant 0 : index
    %c0_89 = arith.constant 0 : index
    %326 = vector.load %arg6[%c0_88, %c0_89] : memref<1x193xf32, #tpu.memory_space<vmem>>, vector<1x193xf32>
    %327 = vector.broadcast %326 : vector<1x193xf32> to vector<8x193xf32>
    %328 = arith.addf %325, %327 : vector<8x193xf32>
    %329 = vector.shape_cast %328 : vector<8x193xf32> to vector<1x8x193xf32>
    %330 = vector.extract_strided_slice %329 {offsets = [0, 0, 0], sizes = [1, 8, 64], strides = [1, 1, 1]} : vector<1x8x193xf32> to vector<1x8x64xf32>
    %331 = vector.extract_strided_slice %329 {offsets = [0, 0, 64], sizes = [1, 8, 64], strides = [1, 1, 1]} : vector<1x8x193xf32> to vector<1x8x64xf32>
    %332 = vector.extract_strided_slice %329 {offsets = [0, 0, 128], sizes = [1, 8, 64], strides = [1, 1, 1]} : vector<1x8x193xf32> to vector<1x8x64xf32>
    %333 = vector.extract_strided_slice %329 {offsets = [0, 0, 192], sizes = [1, 8, 1], strides = [1, 1, 1]} : vector<1x8x193xf32> to vector<1x8x1xf32>
    %cst_90 = arith.constant dense<0xFF800000> : vector<1x1xf32>
    %334 = vector.multi_reduction <maximumf>, %333, %cst_90 [1] : vector<1x8x1xf32> to vector<1x1xf32>
    %335 = vector.shape_cast %334 : vector<1x1xf32> to vector<1x1x1xf32>
    %336 = vector.broadcast %335 : vector<1x1x1xf32> to vector<1x8x1xf32>
    %337 = arith.subf %333, %336 : vector<1x8x1xf32>
    %338 = math.exp %337 : vector<1x8x1xf32>
    %cst_91 = arith.constant dense<0.000000e+00> : vector<1x1xf32>
    %339 = vector.multi_reduction <add>, %338, %cst_91 [1] : vector<1x8x1xf32> to vector<1x1xf32>
    %340 = vector.shape_cast %339 : vector<1x1xf32> to vector<1x1x1xf32>
    %341 = vector.broadcast %340 : vector<1x1x1xf32> to vector<1x8x1xf32>
    %342 = arith.divf %338, %341 : vector<1x8x1xf32>
    %343 = vector.broadcast %342 : vector<1x8x1xf32> to vector<1x8x64xf32>
    %344 = arith.mulf %322, %343 : vector<1x8x64xf32>
    %cst_92 = arith.constant dense<0.000000e+00> : vector<1x64xf32>
    %345 = vector.multi_reduction <add>, %344, %cst_92 [1] : vector<1x8x64xf32> to vector<1x64xf32>
    "tpu.trace_start"() <{level = 10 : i32, message = "bqd,bkd->bqk"}> : () -> ()
    %cst_93 = arith.constant dense<0.000000e+00> : vector<1x8x8xf32>
    %346 = tpu.matmul %330, %331, %cst_93 {dimension_numbers = #tpu.dot_dimension_numbers<[2], [2], [1], [1], [0, 0, 0, 1, 1, 1], [0], [0]>} : vector<1x8x64xf32>, vector<1x8x64xf32>, vector<1x8x8xf32> -> vector<1x8x8xf32>
    "tpu.trace_stop"() : () -> ()
    %cst_94 = arith.constant dense<0xFF800000> : vector<1x8xf32>
    %347 = vector.multi_reduction <maximumf>, %346, %cst_94 [2] : vector<1x8x8xf32> to vector<1x8xf32>
    %348 = vector.shape_cast %347 : vector<1x8xf32> to vector<1x8x1xf32>
    %349 = vector.broadcast %348 : vector<1x8x1xf32> to vector<1x8x8xf32>
    %350 = arith.subf %346, %349 : vector<1x8x8xf32>
    %351 = math.exp %350 : vector<1x8x8xf32>
    %cst_95 = arith.constant dense<0.000000e+00> : vector<1x8xf32>
    %352 = vector.multi_reduction <add>, %351, %cst_95 [2] : vector<1x8x8xf32> to vector<1x8xf32>
    %353 = vector.shape_cast %352 : vector<1x8xf32> to vector<1x8x1xf32>
    %354 = vector.broadcast %353 : vector<1x8x1xf32> to vector<1x8x8xf32>
    %355 = arith.divf %351, %354 : vector<1x8x8xf32>
    "tpu.trace_start"() <{level = 10 : i32, message = "bqk,bkd->bqd"}> : () -> ()
    %cst_96 = arith.constant dense<0.000000e+00> : vector<1x8x64xf32>
    %356 = tpu.matmul %355, %332, %cst_96 {dimension_numbers = #tpu.dot_dimension_numbers<[2], [1], [1], [2], [0, 0, 0, 1, 1, 2], [0], [0]>} : vector<1x8x8xf32>, vector<1x8x64xf32>, vector<1x8x64xf32> -> vector<1x8x64xf32>
    "tpu.trace_stop"() : () -> ()
    %cst_97 = arith.constant dense<0xFF800000> : vector<1x64xf32>
    %357 = vector.multi_reduction <maximumf>, %356, %cst_97 [1] : vector<1x8x64xf32> to vector<1x64xf32>
    %cst_98 = arith.constant 0.000000e+00 : f32
    %358 = vector.broadcast %cst_98 : f32 to vector<1x21x16xf32>
    %c0_99 = arith.constant 0 : index
    %c0_100 = arith.constant 0 : index
    %c0_101 = arith.constant 0 : index
    %359 = vector.load %arg13[%c0_99, %c0_100, %c0_101] : memref<1x21x16xf32, #tpu.memory_space<vmem>>, vector<1x21x16xf32>
    tpu.vector_store %arg13[%c0_99, %c0_100, %c0_101], %358 {strides = array<i32>} : memref<1x21x16xf32, #tpu.memory_space<vmem>>, vector<1x21x16xf32>,
    %c0_102 = arith.constant 0 : index
    %c3_103 = arith.constant 3 : index
    %c0_104 = arith.constant 0 : index
    %360 = vector.load %arg13[%c0_102, %c3_103, %c0_104] : memref<1x21x16xf32, #tpu.memory_space<vmem>>, vector<1x8x16xf32>
    tpu.vector_store %arg13[%c0_102, %c3_103, %c0_104], %0 {strides = array<i32>} : memref<1x21x16xf32, #tpu.memory_space<vmem>>, vector<1x8x16xf32>,
    %cst_105 = arith.constant 0.000000e+00 : f32
    %361 = vector.broadcast %cst_105 : f32 to vector<16x384xf32>
    %c0_106 = arith.constant 0 : index
    %c0_107 = arith.constant 0 : index
    %c0_108 = arith.constant 0 : index
    %362 = vector.load %arg13[%c0_106, %c0_107, %c0_108] : memref<1x21x16xf32, #tpu.memory_space<vmem>>, vector<1x16x16xf32>
    %363 = vector.shape_cast %362 : vector<1x16x16xf32> to vector<16x16xf32>
    %c0_109 = arith.constant 0 : index
    %c0_110 = arith.constant 0 : index
    %c0_111 = arith.constant 0 : index
    %364 = vector.load %arg7[%c0_109, %c0_110, %c0_111] : memref<6x16x384xf32, #tpu.memory_space<vmem>>, vector<1x16x384xf32>
    %365 = vector.shape_cast %364 : vector<1x16x384xf32> to vector<16x384xf32>
    %cst_112 = arith.constant dense<0.000000e+00> : vector<16x384xf32>
    %366 = tpu.matmul %363, %365, %cst_112 {dimension_numbers = #tpu.dot_dimension_numbers<[1], [0], [0], [1], [0, 0, 1, 1], [], []>} : vector<16x16xf32>, vector<16x384xf32>, vector<16x384xf32> -> vector<16x384xf32>
    %367 = arith.addf %361, %366 : vector<16x384xf32>
    %c0_113 = arith.constant 0 : index
    %c1_114 = arith.constant 1 : index
    %c0_115 = arith.constant 0 : index
    %368 = vector.load %arg13[%c0_113, %c1_114, %c0_115] : memref<1x21x16xf32, #tpu.memory_space<vmem>>, vector<1x16x16xf32>
    %369 = vector.shape_cast %368 : vector<1x16x16xf32> to vector<16x16xf32>
    %c1_116 = arith.constant 1 : index
    %c0_117 = arith.constant 0 : index
    %c0_118 = arith.constant 0 : index
    %370 = vector.load %arg7[%c1_116, %c0_117, %c0_118] : memref<6x16x384xf32, #tpu.memory_space<vmem>>, vector<1x16x384xf32>
    %371 = vector.shape_cast %370 : vector<1x16x384xf32> to vector<16x384xf32>
    %cst_119 = arith.constant dense<0.000000e+00> : vector<16x384xf32>
    %372 = tpu.matmul %369, %371, %cst_119 {dimension_numbers = #tpu.dot_dimension_numbers<[1], [0], [0], [1], [0, 0, 1, 1], [], []>} : vector<16x16xf32>, vector<16x384xf32>, vector<16x384xf32> -> vector<16x384xf32>
    %373 = arith.addf %367, %372 : vector<16x384xf32>
    %c0_120 = arith.constant 0 : index
    %c2_121 = arith.constant 2 : index
    %c0_122 = arith.constant 0 : index
    %374 = vector.load %arg13[%c0_120, %c2_121, %c0_122] : memref<1x21x16xf32, #tpu.memory_space<vmem>>, vector<1x16x16xf32>
    %375 = vector.shape_cast %374 : vector<1x16x16xf32> to vector<16x16xf32>
    %c2_123 = arith.constant 2 : index
    %c0_124 = arith.constant 0 : index
    %c0_125 = arith.constant 0 : index
    %376 = vector.load %arg7[%c2_123, %c0_124, %c0_125] : memref<6x16x384xf32, #tpu.memory_space<vmem>>, vector<1x16x384xf32>
    %377 = vector.shape_cast %376 : vector<1x16x384xf32> to vector<16x384xf32>
    %cst_126 = arith.constant dense<0.000000e+00> : vector<16x384xf32>
    %378 = tpu.matmul %375, %377, %cst_126 {dimension_numbers = #tpu.dot_dimension_numbers<[1], [0], [0], [1], [0, 0, 1, 1], [], []>} : vector<16x16xf32>, vector<16x384xf32>, vector<16x384xf32> -> vector<16x384xf32>
    %379 = arith.addf %373, %378 : vector<16x384xf32>
    %c0_127 = arith.constant 0 : index
    %c3_128 = arith.constant 3 : index
    %c0_129 = arith.constant 0 : index
    %380 = vector.load %arg13[%c0_127, %c3_128, %c0_129] : memref<1x21x16xf32, #tpu.memory_space<vmem>>, vector<1x16x16xf32>
    %381 = vector.shape_cast %380 : vector<1x16x16xf32> to vector<16x16xf32>
    %c3_130 = arith.constant 3 : index
    %c0_131 = arith.constant 0 : index
    %c0_132 = arith.constant 0 : index
    %382 = vector.load %arg7[%c3_130, %c0_131, %c0_132] : memref<6x16x384xf32, #tpu.memory_space<vmem>>, vector<1x16x384xf32>
    %383 = vector.shape_cast %382 : vector<1x16x384xf32> to vector<16x384xf32>
    %cst_133 = arith.constant dense<0.000000e+00> : vector<16x384xf32>
    %384 = tpu.matmul %381, %383, %cst_133 {dimension_numbers = #tpu.dot_dimension_numbers<[1], [0], [0], [1], [0, 0, 1, 1], [], []>} : vector<16x16xf32>, vector<16x384xf32>, vector<16x384xf32> -> vector<16x384xf32>
    %385 = arith.addf %379, %384 : vector<16x384xf32>
    %c0_134 = arith.constant 0 : index
    %c4_135 = arith.constant 4 : index
    %c0_136 = arith.constant 0 : index
    %386 = vector.load %arg13[%c0_134, %c4_135, %c0_136] : memref<1x21x16xf32, #tpu.memory_space<vmem>>, vector<1x16x16xf32>
    %387 = vector.shape_cast %386 : vector<1x16x16xf32> to vector<16x16xf32>
    %c4_137 = arith.constant 4 : index
    %c0_138 = arith.constant 0 : index
    %c0_139 = arith.constant 0 : index
    %388 = vector.load %arg7[%c4_137, %c0_138, %c0_139] : memref<6x16x384xf32, #tpu.memory_space<vmem>>, vector<1x16x384xf32>
    %389 = vector.shape_cast %388 : vector<1x16x384xf32> to vector<16x384xf32>
    %cst_140 = arith.constant dense<0.000000e+00> : vector<16x384xf32>
    %390 = tpu.matmul %387, %389, %cst_140 {dimension_numbers = #tpu.dot_dimension_numbers<[1], [0], [0], [1], [0, 0, 1, 1], [], []>} : vector<16x16xf32>, vector<16x384xf32>, vector<16x384xf32> -> vector<16x384xf32>
    %391 = arith.addf %385, %390 : vector<16x384xf32>
    %c0_141 = arith.constant 0 : index
    %c5_142 = arith.constant 5 : index
    %c0_143 = arith.constant 0 : index
    %392 = vector.load %arg13[%c0_141, %c5_142, %c0_143] : memref<1x21x16xf32, #tpu.memory_space<vmem>>, vector<1x16x16xf32>
    %393 = vector.shape_cast %392 : vector<1x16x16xf32> to vector<16x16xf32>
    %c5_144 = arith.constant 5 : index
    %c0_145 = arith.constant 0 : index
    %c0_146 = arith.constant 0 : index
    %394 = vector.load %arg7[%c5_144, %c0_145, %c0_146] : memref<6x16x384xf32, #tpu.memory_space<vmem>>, vector<1x16x384xf32>
    %395 = vector.shape_cast %394 : vector<1x16x384xf32> to vector<16x384xf32>
    %cst_147 = arith.constant dense<0.000000e+00> : vector<16x384xf32>
    %396 = tpu.matmul %393, %395, %cst_147 {dimension_numbers = #tpu.dot_dimension_numbers<[1], [0], [0], [1], [0, 0, 1, 1], [], []>} : vector<16x16xf32>, vector<16x384xf32>, vector<16x384xf32> -> vector<16x384xf32>
    %397 = arith.addf %391, %396 : vector<16x384xf32>
    %c0_148 = arith.constant 0 : index
    %c0_149 = arith.constant 0 : index
    %398 = vector.load %arg8[%c0_148, %c0_149] : memref<1x384xf32, #tpu.memory_space<vmem>>, vector<1x384xf32>
    %399 = vector.broadcast %398 : vector<1x384xf32> to vector<16x384xf32>
    %400 = arith.addf %397, %399 : vector<16x384xf32>
    %cst_150 = arith.constant 0.000000e+00 : f32
    %401 = vector.broadcast %cst_150 : f32 to vector<16x384xf32>
    %402 = arith.maximumf %400, %401 : vector<16x384xf32>
    %403 = vector.shape_cast %402 : vector<16x384xf32> to vector<1x16x384xf32>
    %404 = tpu.iota {dimensions = array<i32: 1>} : vector<1x16x1xi32>
    %c9_i32 = arith.constant 9 : i32
    %405 = vector.broadcast %c9_i32 : i32 to vector<1x16x1xi32>
    %406 = arith.cmpi slt, %404, %405 : vector<1x16x1xi32>
    %cst_151 = arith.constant 0.000000e+00 : f32
    %407 = vector.shape_cast %406 : vector<1x16x1xi1> to vector<1x16x1xi1>
    %408 = vector.broadcast %407 : vector<1x16x1xi1> to vector<1x16x384xi1>
    %409 = vector.broadcast %cst_151 : f32 to vector<1x16x384xf32>
    %410 = arith.select %408, %403, %409 : vector<1x16x384xi1>, vector<1x16x384xf32>
    %cst_152 = arith.constant dense<0xFF800000> : vector<1x384xf32>
    %411 = vector.multi_reduction <maximumf>, %410, %cst_152 [1] : vector<1x16x384xf32> to vector<1x384xf32>
    %412 = tpu.concatenate %345, %411, %357 in 1 : vector<1x64xf32>, vector<1x384xf32>, vector<1x64xf32> -> vector<1x512xf32>
    %c0_153 = arith.constant 0 : index
    %c0_154 = arith.constant 0 : index
    %413 = vector.load %arg9[%c0_153, %c0_154] : memref<512x3xf32, #tpu.memory_space<vmem>>, vector<512x3xf32>
    %cst_155 = arith.constant dense<0.000000e+00> : vector<1x3xf32>
    %414 = tpu.matmul %412, %413, %cst_155 {dimension_numbers = #tpu.dot_dimension_numbers<[1], [0], [0], [1], [0, 0, 1, 1], [], []>} : vector<1x512xf32>, vector<512x3xf32>, vector<1x3xf32> -> vector<1x3xf32>
    %c0_156 = arith.constant 0 : index
    %c0_157 = arith.constant 0 : index
    %415 = vector.load %arg10[%c0_156, %c0_157] : memref<1x3xf32, #tpu.memory_space<vmem>>, vector<1x3xf32>
    %416 = arith.addf %414, %415 : vector<1x3xf32>
    %417 = vector.shape_cast %416 : vector<1x3xf32> to vector<1x1x3xf32>
    %c0_158 = arith.constant 0 : index
    %c0_159 = arith.constant 0 : index
    %c0_160 = arith.constant 0 : index
    %418 = vector.load %arg11[%c0_158, %c0_159, %c0_160] : memref<1x1x3xf32, #tpu.memory_space<vmem>>, vector<1x1x3xf32>
    tpu.vector_store %arg11[%c0_158, %c0_159, %c0_160], %417 {strides = array<i32>} : memref<1x1x3xf32, #tpu.memory_space<vmem>>, vector<1x1x3xf32>,
    return
  }
  func.func @transform_0(%arg0: i32) -> (i32, i32, i32) {
    %c0_i32 = arith.constant 0 : i32
    %c0_i32_0 = arith.constant 0 : i32
    %c0_i32_1 = arith.constant 0 : i32
    return %arg0, %c0_i32, %c0_i32_0 : i32, i32, i32
  }
  func.func @transform_1(%arg0: i32) -> (i32, i32) {
    %c0_i32 = arith.constant 0 : i32
    %c0_i32_0 = arith.constant 0 : i32
    %c0_i32_1 = arith.constant 0 : i32
    return %c0_i32, %c0_i32_0 : i32, i32
  }
  func.func @transform_2(%arg0: i32) -> (i32, i32) {
    %c0_i32 = arith.constant 0 : i32
    %c0_i32_0 = arith.constant 0 : i32
    %c0_i32_1 = arith.constant 0 : i32
    return %c0_i32, %c0_i32_0 : i32, i32
  }
  func.func @transform_3(%arg0: i32) -> (i32, i32) {
    %c0_i32 = arith.constant 0 : i32
    %c0_i32_0 = arith.constant 0 : i32
    %c0_i32_1 = arith.constant 0 : i32
    return %c0_i32, %c0_i32_0 : i32, i32
  }
  func.func @transform_4(%arg0: i32) -> (i32, i32) {
    %c0_i32 = arith.constant 0 : i32
    %c0_i32_0 = arith.constant 0 : i32
    %c0_i32_1 = arith.constant 0 : i32
    return %c0_i32, %c0_i32_0 : i32, i32
  }
  func.func @transform_5(%arg0: i32) -> (i32, i32) {
    %c0_i32 = arith.constant 0 : i32
    %c0_i32_0 = arith.constant 0 : i32
    %c0_i32_1 = arith.constant 0 : i32
    return %c0_i32, %c0_i32_0 : i32, i32
  }
  func.func @transform_6(%arg0: i32) -> (i32, i32, i32) {
    %c0_i32 = arith.constant 0 : i32
    %c0_i32_0 = arith.constant 0 : i32
    %c0_i32_1 = arith.constant 0 : i32
    %c0_i32_2 = arith.constant 0 : i32
    return %c0_i32, %c0_i32_0, %c0_i32_1 : i32, i32, i32
  }
  func.func @transform_7(%arg0: i32) -> (i32, i32) {
    %c0_i32 = arith.constant 0 : i32
    %c0_i32_0 = arith.constant 0 : i32
    %c0_i32_1 = arith.constant 0 : i32
    return %c0_i32, %c0_i32_0 : i32, i32
  }
  func.func @transform_8(%arg0: i32) -> (i32, i32) {
    %c0_i32 = arith.constant 0 : i32
    %c0_i32_0 = arith.constant 0 : i32
    %c0_i32_1 = arith.constant 0 : i32
    return %c0_i32, %c0_i32_0 : i32, i32
  }
  func.func @transform_9(%arg0: i32) -> (i32, i32) {
    %c0_i32 = arith.constant 0 : i32
    %c0_i32_0 = arith.constant 0 : i32
    %c0_i32_1 = arith.constant 0 : i32
    return %c0_i32, %c0_i32_0 : i32, i32
  }
  func.func @transform_10(%arg0: i32) -> (i32, i32, i32) {
    %c0_i32 = arith.constant 0 : i32
    %c0_i32_0 = arith.constant 0 : i32
    %c0_i32_1 = arith.constant 0 : i32
    return %arg0, %c0_i32, %c0_i32_0 : i32, i32, i32
  }
}

</mosaic_0001>

<bundles_post_ra>
// kernel: c_bla_forward.1
= control target key start
LH: loop header
LB: loop body
LE: loop exit
PB: predicated region body
PF: predicated region fallthrough
CT: control target
= control target key end

     0   :  { %s4601_s0 = inlined_call_operand.vmem [shape: f32[2,8,16], index: 0, kind: input, shape index: {}]   ;;  %s4602_s1 = inlined_call_operand.vmem [shape: f32[16,256], index: 1, kind: input, shape index: {}]   ;;  %s4603_s2 = inlined_call_operand.vmem [shape: f32[1,256], index: 2, kind: input, shape index: {}]   ;;  %s4604_s3 = inlined_call_operand.vmem [shape: f32[32,256], index: 3, kind: input, shape index: {}]   ;;  %s4605_s4 = inlined_call_operand.vmem [shape: f32[64,193], index: 4, kind: input, shape index: {}]   ;;  %s4606_s5 = inlined_call_operand.vmem [shape: f32[1,193], index: 5, kind: input, shape index: {}]   ;;  %s4607_s6 = inlined_call_operand.vmem [shape: f32[6,16,384], index: 6, kind: input, shape index: {}]   ;;  %s4608_s7 = inlined_call_operand.vmem [shape: f32[1,384], index: 7, kind: input, shape index: {}]   ;;  %s4609_s8 = inlined_call_operand.vmem [shape: f32[512,3], index: 8, kind: input, shape index: {}]   ;;  %s4610_s9 = inlined_call_operand.vmem [shape: f32[1,3], index: 9, kind: input, shape index: {}]   ;;  %s4611_s10 = inlined_call_operand.hbm [shape: f32[2,1,3], index: 10, kind: output, shape index: {}]  }
   0x1   :  { %4615 = sst [smem:[#allocation7_spill]] %s4601_s0 }
   0x2   :  { %15 = vsyncpa [#allocation5], 0 }
   0x3   :  { %17 = vsyncpa [#allocation5 + $0x1], 0  ;;  %s3768_s13 = smov 0   ;;  %s3770_s14 = smov 0  }
   0x4   :  { %s3772_s15 = smov 0   ;;  %s3774_s16 = smov 0  }
   0x5 LB: > { %s3789_s17 = sadd.s32 4294967295, %s3705_s16   ;;  %s3058_s18 = sadd.s32 4294967294, %s3705_s16   ;;  %s3705_s16 = sphi %s3774_s16, %s4624_s16   ;;  %s3701_s15 = sphi %s3772_s15, %s4623_s15   ;;  %s3697_s14 = sphi %s3770_s14, %s4622_s14   ;;  %s3693_s13 = sphi %s3768_s13, %s4621_s13  }
   0x6   : > { %s3793_s19 = sadd.s32 1, %s3705_s16   ;;  %s245_s20 = sadd.s32 1, %s3701_s15 }
   0x7   : > { %s242_s21 = ssub.s32 %s3705_s16, %s3793_s19  ;;  %p255_p0 = scmp.ne.s32.totalorder %s3701_s15, %s3697_s14 }
   0x8   : > { %p243_p1 = scmp.eq.s32.totalorder %s242_s21, 0  ;;  %p256_p2 = scmp.eq.s32.totalorder %s3789_s17, 1 }
   0x9   : > { %p261_p3 = scmp.ne.s32.totalorder %s3697_s14, %s3693_s13  ;;  %p262_p4 = scmp.eq.s32.totalorder %s3058_s18, 1 }
   0xa   : > { %s3804_s22 = scalar_select %p243_p1, %s3701_s15, %s245_s20  }
   0xb   : > { %p3806_p5 = por %p256_p2, %p255_p0  ;;  %p3810_p6 = por %p262_p4, %p261_p3 }
   0xc   : > { %p3061_p7 = scmp.ge.s32.totalorder %s3705_s16, 1  ;;  %p314_p8 = scmp.lt.s32.totalorder %s3705_s16, 3 }
   0xe   : > { %p315_p9 = pnand %p3061_p7, %p314_p8 }
   0xf   : > { %v356_v0 = vld [vmem:[%s4602_s1 + $0x8] sm:$0xff] (!%p315_p9)  ;;  %v358_v1 = vld [vmem:[%s4602_s1 + $0x18] sm:$0xff] (!%p315_p9)  ;;  %p350_p10 = scmp.lt.s32.totalorder (!%p315_p9), %s3789_s17, 1  ;;  %vm371_vm0 = vcmask (!%p315_p9), 130048   ;;  %v355_v5 = vld [vmem:[%s4602_s1] sm:$0xff] (!%p315_p9)  ;;  %v3707_v7 = vmov (!%p315_p9), 0.0   ;;  %v361_v20 = vlaneseq (!%p315_p9) }
  0x10   : > { %318 = sbr.rel (%p315_p9) target bundleno = 7167 (0x1bff), region = 60  ;;  %v447_v2 = vld [vmem:[%s4604_s3 + $0x8] sm:$0xff] (!%p315_p9)  ;;  %v3290_v3 = vpack.c.bf16 (!%p315_p9), %v358_v1, %v356_v0  ;;  %v449_v4 = vld [vmem:[%s4604_s3 + $0x18] sm:$0xff] (!%p315_p9)  ;;  %v357_v6 = vld [vmem:[%s4602_s1 + $0x10] sm:$0xff] (!%p315_p9)  ;;  %439 = vmatprep.mubr.f32.mxu0 (!%p315_p9), %v3707_v7  ;;  %1667 = vst.msk [vmem:[#allocation3] sm:$0xff] (!%p315_p9), %vm371_vm0, %v3707_v7  ;;  %522 = vmatprep.mubr.f32.mxu1 (!%p315_p9), %v3707_v7  ;;  %s4618_s0 = sld [smem:[#allocation7_spill]] (!%p315_p9) }
  0x11   : > { %1668 = vst.msk [vmem:[#allocation3 + $0x8] sm:$0xff] (!%p315_p9), %vm371_vm0, %v3707_v7  ;;  %v3841_v8 = vpack.c.bf16 (!%p315_p9), %v449_v4, %v447_v2  ;;  %v3292_v9 = vpack.c.bf16 (!%p315_p9), %v357_v6, %v355_v5  ;;  %v446_v10 = vld [vmem:[%s4604_s3] sm:$0xff] (!%p315_p9)  ;;  %v448_v11 = vld [vmem:[%s4604_s3 + $0x10] sm:$0xff] (!%p315_p9)  ;;  %v451_v12 = vld [vmem:[%s4604_s3 + $0x28] sm:$0xff] (!%p315_p9)  ;;  %v3892_v21 = vshrl.u32 (!%p315_p9), %v361_v20, 7  ;;  %vm534_vm1 = vcmask (!%p315_p9), 1040384  }
  0x12   : > { %3291 = vmatprep.subr.bf16.mxu0 (!%p315_p9), %v3290_v3  ;;  %v3855_v13 = vpack.c.bf16 (!%p315_p9), %v448_v11, %v446_v10  ;;  %v453_v14 = vld [vmem:[%s4604_s3 + $0x38] sm:$0xff] (!%p315_p9)  ;;  %v450_v15 = vld [vmem:[%s4604_s3 + $0x20] sm:$0xff] (!%p315_p9)  ;;  %v452_v16 = vld [vmem:[%s4604_s3 + $0x30] sm:$0xff] (!%p315_p9)  ;;  %s4613_s20 = smov (!%p315_p9), 64   ;;  %s4612_s21 = smov (!%p315_p9), 32   ;;  %vm564_vm2 = vcmask (!%p315_p9), 253952  }
  0x13   : > { %3295 = vmatprep.subr.bf16.mxu1 (!%p315_p9), %v3841_v8  ;;  %3293 = vmatpush1.bf16.msra.mxu0 (!%p315_p9), %v3292_v9  ;;  %v3867_v17 = vpack.c.bf16 (!%p315_p9), %v453_v14, %v451_v12  ;;  %v3873_v18 = vpack.c.bf16 (!%p315_p9), %v452_v16, %v450_v15  ;;  %v3895_v22 = vsub.s32 (!%p315_p9), 1, %v3892_v21  ;;  %v359_v23 = vld [vmem:[%s4603_s2] sm:$0x3] (!%p315_p9)  ;;  %v3901_v24 = vsub.s32 (!%p315_p9), 0, %v3892_v21  ;;  %s4619_s26 = smov (!%p315_p9), 64   ;;  %s4620_s27 = smov (!%p315_p9), 32  }
  0x14   : > { %3297 = vmatpush1.bf16.msra.mxu1 (!%p315_p9), %v3855_v13  ;;  %3319 = vmatprep.subr.bf16.mxu0 (!%p315_p9), %v3841_v8  ;;  %vm454_vm3 = vcmask (!%p315_p9), 261120   ;;  %vm569_vm4 = vcmask (!%p315_p9), 517377   ;;  %vm1390_vm5 = vcmask (!%p315_p9), 523264   ;;  %vm3710_vm6 = vmmov (!%p315_p9), 0  }
  0x15   : > { %3299 = vmatprep.subr.bf16.mxu1 (!%p315_p9), %v3867_v17  ;;  %v368_v25 = vrot.slane (!%p315_p9), %v359_v23, %v3895_v22  ;;  %v364_v26 = vrot.slane (!%p315_p9), %v359_v23, %v3901_v24  ;;  %vm1575_vm7 = vcmask (!%p315_p9), 64512   ;;  %vm1669_vm8 = vcmask (!%p315_p9), 126976  }
  0x16   : > { %1670 = vst.msk [vmem:[#allocation3 + $0x10] sm:$0x1f] (!%p315_p9), %vm1669_vm8, %v3707_v7  ;;  %vm1465_vm9 = vcmask (!%p315_p9), 531968   ;;  %vm2988_vm11 = vcmask (!%p315_p9), 16384  }
  0x17   : > { %s351_s30 = scalar_select %p350_p10, %s3789_s17, 1 }
  0x18   : > { %3301 = vmatpush1.bf16.msra.mxu1 %v3873_v18 }
  0x19   : > { %s3062_s28 = sshll.u32 %s351_s30, 3  ;;  %3303 = vmatprep.subr.bf16.mxu1 %v3841_v8 }
  0x1a   : > { %s353_s12 = scalar_lea.vmem %s4618_s0, %s3062_s28  ;;  %s3137_s0 = sshll.u32 %s3789_s17, 4 }
  0x1b   : > { %v354_v19 = vld [vmem:[%s353_s12] sm:$0xff]  ;;  %523 = vmatmul.mubr.f32.vlgmr.msra.gmra.mrb[0].mxu1 %v3707_v7  ;;  %s3712_s17 = smov [#allocation4]  }
  0x1c   : > { %3063 = vmatmul.mubr.msk.f32.vlgmr.msra.gmra.mrb[0].mxu0 %vm371_vm0, %v354_v19  ;;  %1671 = vst.msk [vmem:[#allocation3 + $0x3] sm:$0xff] %vm371_vm0, %v354_v19  ;;  %3305 = vmatpush1.bf16.msra.mxu1 %v3855_v13  ;;  %s3647_s29 = sshll.u32 %s3712_s17, 4  ;;  %s3648_s29 = int_to_ptr.vmem [resolvable:$false] %s3647_s29 }
  0x1d   : > { %3321 = vmatpush1.bf16.msra.mxu0 %v3855_v13  ;;  %864 = vmatprep.mubr.f32.mxu0 %v3707_v7  ;;  %s3649_s11 = scalar_lea.vmem %s3648_s29, 32 }
  0x1e   : > { %3323 = vmatprep.subr.bf16.mxu0 %v3867_v17  ;;  %637 = vmatprep.mubr.f32.mxu1 %v3707_v7 }
  0x1f   : > { %3307 = vmatprep.subr.bf16.mxu1 %v3867_v17 }
  0x20   : > { %3309 = vmatpush1.bf16.msra.mxu1 %v3873_v18 }
  0x21   : > { %3325 = vmatpush1.bf16.msra.mxu0 %v3873_v18  ;;  %3311 = vmatprep.subr.bf16.mxu1 %v3841_v8 }
  0x22   : > { %3335 = vmatprep.subr.bf16.mxu0 %v3841_v8 }
  0xee   : > { %v524_v32 = vpop.f32.mrb[0].mxu1 }
  0xef   : > { %v441_v27 = vpop.f32.mrb[0].mxu0  ;;  %v526_v34 = vpop.f32.mrb[1].mxu1 }
  0xf0   : > { %v443_v28 = vpop.f32.mrb[1].mxu0  ;;  %v3907_v30 = vadd.f32 %v441_v27, %v364_v26 }
  0xf1   : > { %v3905_v29 = vadd.f32 %v443_v28, %v368_v25 }
  0xf2   : > { %v529_v33 = vadd.f32 %v524_v32, %v3907_v30  ;;  %v645_v51 = vrot.slane %v3907_v30, 1  ;;  %v758_v10 = vrot.slane %v3907_v30, 2 }
  0xf3   : > { %v531_v31 = vrot.slane %v3905_v29, 6  ;;  %v648_v53 = vrot.slane %v3905_v29, 5  ;;  %v761_v12 = vrot.slane %v3905_v29, 4 }
  0xf5   : > { %v533_v35 = vadd.f32 %v531_v31, %v526_v34 }
  0xf7   : > { %v535_v36 = vsel %vm534_vm1, %v529_v33, %v533_v35 }
  0xf8   : > { %3571 = vtanh.f32 %v535_v36  ;;  %v3064_v38 = vmul.f32 -1.442695, %v535_v36 }
  0xfa   : > { %3573 = vpow2.f32 %v3064_v38 }
 0x102   : > { %v3572_v37 = vpop.eup %3571 }
 0x103   : > { %545 = vrot.lane.b32.xlu0 %v3572_v37, %s4613_s20 }
 0x104   : > { %v3574_v39 = vpop.eup %3573 }
 0x105   : > { %v539_v40 = vadd.f32 1.0, %v3574_v39  ;;  %v871_v39 = vrot.slane %v3907_v30, 3 }
 0x107   : > { %3575 = vrcp.f32 %v539_v40 }
 0x111   : > { %v3576_v41 = vpop.eup %3575 }
 0x112   : > { %v543_v44 = vmul.f32 0.0, %v3576_v41 }
 0x175   : > { %v546_v42 = vpop.permute.xlu0 %545 }
 0x176   : > { %v548_v43 = vmul.f32 %v3576_v41, %v546_v42 }
 0x178   : > { %550 = vrot.lane.b32.xlu0 %v548_v43, %s4612_s21 }
 0x1ea   : > { %v551_v45 = vpop.permute.xlu0 %550 }
 0x1eb   : > { %v553_v46 = vadd.f32 %v551_v45, %v543_v44 }
 0x1ed   : > { %3577 = vtanh.f32 %v553_v46 }
 0x1f7   : > { %v3578_v47 = vpop.eup %3577 }
 0x1f8   : > { %556 = vrot.lane.b32.xlu1 %v3578_v47, %s4613_s20 }
 0x26a   : > { %v557_v48 = vpop.permute.xlu1 %556 }
 0x26b   : > { %v3915_v49 = vmul.f32 %v3576_v41, %v557_v48  ;;  %v874_v41 = vrot.slane %v3905_v29, 3 }
 0x26d   : > { %561 = vrot.lane.b32.xlu1 %v3915_v49, %s4612_s21 }
 0x2df   : > { %v562_v50 = vpop.permute.xlu1 %561 }
 0x2e0   : > { %565 = vst.msk [vmem:[#allocation2] sm:$0x1] %vm564_vm2, %v562_v50  ;;  %3065 = vmatmul.mubr.msk.f32.vlgmr.msra.gmra.mrb[2].mxu1 %vm454_vm3, %v562_v50 }
 0x2e1   : > { %3313 = vmatpush1.bf16.msra.mxu1 %v3855_v13  ;;  %751 = vmatprep.mubr.f32.mxu1 %v3707_v7 }
 0x2e2   : > { %3315 = vmatprep.subr.bf16.mxu1 %v3867_v17 }
 0x2e5   : > { %3317 = vmatpush1.bf16.msra.mxu1 %v3873_v18 }
 0x2e6   : > { %3327 = vmatprep.subr.bf16.mxu1 %v3841_v8 }
 0x3b3   : > { %v639_v52 = vpop.f32.mrb[2].mxu1 }
 0x3b4   : > { %v647_v54 = vadd.f32 %v645_v51, %v639_v52  ;;  %v641_v55 = vpop.f32.mrb[3].mxu1 }
 0x3b5   : > { %v650_v56 = vadd.f32 %v648_v53, %v641_v55 }
 0x3b7   : > { %v651_v57 = vsel %vm534_vm1, %v647_v54, %v650_v56 }
 0x3b8   : > { %3579 = vtanh.f32 %v651_v57  ;;  %v3066_v59 = vmul.f32 -1.442695, %v651_v57 }
 0x3ba   : > { %3581 = vpow2.f32 %v3066_v59 }
 0x3c2   : > { %v3580_v58 = vpop.eup %3579 }
 0x3c3   : > { %661 = vrot.lane.b32.xlu0 %v3580_v58, %s4613_s20 }
 0x3c4   : > { %v3582_v60 = vpop.eup %3581 }
 0x3c5   : > { %v655_v61 = vadd.f32 1.0, %v3582_v60  ;;  %v984_v60 = vrot.slane %v3907_v30, 4 }
 0x3c7   : > { %3583 = vrcp.f32 %v655_v61 }
 0x3d1   : > { %v3584_v62 = vpop.eup %3583 }
 0x3d2   : > { %v659_v1 = vmul.f32 %v3584_v62, %v553_v46 }
 0x435   : > { %v662_v63 = vpop.permute.xlu0 %661 }
 0x436   : > { %v664_v0 = vmul.f32 %v3584_v62, %v662_v63 }
 0x438   : > { %666 = vrot.lane.b32.xlu1 %v664_v0, %s4612_s21 }
 0x4aa   : > { %v667_v2 = vpop.permute.xlu1 %666 }
 0x4ab   : > { %v669_v3 = vadd.f32 %v667_v2, %v659_v1 }
 0x4ad   : > { %3585 = vtanh.f32 %v669_v3 }
 0x4b7   : > { %v3586_v4 = vpop.eup %3585 }
 0x4b8   : > { %672 = vrot.lane.b32.xlu0 %v3586_v4, %s4613_s20 }
 0x52a   : > { %v673_v5 = vpop.permute.xlu0 %672 }
 0x52b   : > { %v3932_v6 = vmul.f32 %v3584_v62, %v673_v5  ;;  %v987_v62 = vrot.slane %v3905_v29, 2 }
 0x52d   : > { %677 = vrot.lane.b32.xlu1 %v3932_v6, %s4612_s21 }
 0x59f   : > { %v678_v9 = vpop.permute.xlu1 %677 }
 0x5a0   : > { %680 = vst.msk [vmem:[#allocation2 + $0x1] sm:$0x1] %vm564_vm2, %v678_v9  ;;  %3067 = vmatmul.mubr.msk.f32.vlgmr.msra.gmra.mrb[4].mxu1 %vm454_vm3, %v678_v9 }
 0x5a1   : > { %3329 = vmatpush1.bf16.msra.mxu1 %v3855_v13  ;;  %977 = vmatprep.mubr.f32.mxu1 %v3707_v7 }
 0x5a2   : > { %3331 = vmatprep.subr.bf16.mxu1 %v3867_v17 }
 0x5a5   : > { %3333 = vmatpush1.bf16.msra.mxu1 %v3873_v18 }
 0x5a6   : > { %3343 = vmatprep.subr.bf16.mxu1 %v3841_v8 }
 0x673   : > { %v753_v11 = vpop.f32.mrb[4].mxu1 }
 0x674   : > { %v760_v14 = vadd.f32 %v758_v10, %v753_v11  ;;  %v755_v15 = vpop.f32.mrb[5].mxu1 }
 0x675   : > { %v763_v16 = vadd.f32 %v761_v12, %v755_v15 }
 0x677   : > { %v764_v19 = vsel %vm534_vm1, %v760_v14, %v763_v16 }
 0x678   : > { %3587 = vtanh.f32 %v764_v19  ;;  %v3068_v23 = vmul.f32 -1.442695, %v764_v19 }
 0x67a   : > { %3589 = vpow2.f32 %v3068_v23 }
 0x682   : > { %v3588_v20 = vpop.eup %3587 }
 0x683   : > { %774 = vrot.lane.b32.xlu0 %v3588_v20, %s4613_s20 }
 0x684   : > { %v3590_v25 = vpop.eup %3589 }
 0x685   : > { %v768_v26 = vadd.f32 1.0, %v3590_v25 }
 0x687   : > { %3591 = vrcp.f32 %v768_v26  ;;  %v1097_v26 = vrot.slane %v3907_v30, 5 }
 0x691   : > { %v3592_v27 = vpop.eup %3591 }
 0x692   : > { %v772_v32 = vmul.f32 %v3592_v27, %v669_v3 }
 0x6f5   : > { %v775_v28 = vpop.permute.xlu0 %774 }
 0x6f6   : > { %v777_v31 = vmul.f32 %v3592_v27, %v775_v28  ;;  %v1100_v28 = vrot.slane %v3905_v29, 1 }
 0x6f8   : > { %779 = vrot.lane.b32.xlu1 %v777_v31, %s4612_s21 }
 0x76a   : > { %v780_v33 = vpop.permute.xlu1 %779 }
 0x76b   : > { %v782_v34 = vadd.f32 %v780_v33, %v772_v32 }
 0x76d   : > { %3593 = vtanh.f32 %v782_v34 }
 0x777   : > { %v3594_v35 = vpop.eup %3593 }
 0x778   : > { %785 = vrot.lane.b32.xlu0 %v3594_v35, %s4613_s20 }
 0x7ea   : > { %v786_v36 = vpop.permute.xlu0 %785 }
 0x7eb   : > { %v3949_v37 = vmul.f32 %v3592_v27, %v786_v36 }
 0x7ed   : > { %790 = vrot.lane.b32.xlu1 %v3949_v37, %s4612_s21 }
 0x85f   : > { %v791_v38 = vpop.permute.xlu1 %790 }
 0x860   : > { %793 = vst.msk [vmem:[#allocation2 + $0x2] sm:$0x1] %vm564_vm2, %v791_v38  ;;  %3069 = vmatmul.mubr.msk.f32.vlgmr.msra.gmra.mrb[2].mxu0 %vm454_vm3, %v791_v38 }
 0x861   : > { %3337 = vmatpush1.bf16.msra.mxu0 %v3855_v13  ;;  %1090 = vmatprep.mubr.f32.mxu0 %v3707_v7 }
 0x862   : > { %3339 = vmatprep.subr.bf16.mxu0 %v3867_v17 }
 0x865   : > { %3341 = vmatpush1.bf16.msra.mxu0 %v3873_v18 }
 0x866   : > { %3351 = vmatprep.subr.bf16.mxu0 %v3841_v8 }
 0x933   : > { %v866_v40 = vpop.f32.mrb[2].mxu0 }
 0x934   : > { %v873_v42 = vadd.f32 %v871_v39, %v866_v40  ;;  %v868_v43 = vpop.f32.mrb[3].mxu0 }
 0x935   : > { %v876_v44 = vadd.f32 %v874_v41, %v868_v43 }
 0x937   : > { %v877_v45 = vsel %vm534_vm1, %v873_v42, %v876_v44 }
 0x938   : > { %3595 = vtanh.f32 %v877_v45  ;;  %v3070_v47 = vmul.f32 -1.442695, %v877_v45 }
 0x93a   : > { %3597 = vpow2.f32 %v3070_v47  ;;  %v1210_v47 = vrot.slane %v3907_v30, 6 }
 0x942   : > { %v3596_v46 = vpop.eup %3595 }
 0x943   : > { %887 = vrot.lane.b32.xlu0 %v3596_v46, %s4613_s20 }
 0x944   : > { %v3598_v48 = vpop.eup %3597 }
 0x945   : > { %v881_v50 = vadd.f32 1.0, %v3598_v48 }
 0x947   : > { %3599 = vrcp.f32 %v881_v50 }
 0x951   : > { %v3600_v8 = vpop.eup %3599 }
 0x952   : > { %v885_v53 = vmul.f32 %v3600_v8, %v782_v34 }
 0x9b5   : > { %v888_v51 = vpop.permute.xlu0 %887 }
 0x9b6   : > { %v890_v52 = vmul.f32 %v3600_v8, %v888_v51 }
 0x9b8   : > { %892 = vrot.lane.b32.xlu1 %v890_v52, %s4612_s21 }
 0xa2a   : > { %v893_v54 = vpop.permute.xlu1 %892 }
 0xa2b   : > { %v895_v55 = vadd.f32 %v893_v54, %v885_v53 }
 0xa2d   : > { %3601 = vtanh.f32 %v895_v55 }
 0xa37   : > { %v3602_v56 = vpop.eup %3601 }
 0xa38   : > { %898 = vrot.lane.b32.xlu0 %v3602_v56, %s4613_s20 }
 0xaaa   : > { %v899_v57 = vpop.permute.xlu0 %898 }
 0xaab   : > { %v3966_v58 = vmul.f32 %v3600_v8, %v899_v57 }
 0xaad   : > { %903 = vrot.lane.b32.xlu1 %v3966_v58, %s4612_s21 }
 0xb1f   : > { %v904_v59 = vpop.permute.xlu1 %903 }
 0xb20   : > { %906 = vst.msk [vmem:[#allocation2 + $0x3] sm:$0x1] %vm564_vm2, %v904_v59  ;;  %3071 = vmatmul.mubr.msk.f32.vlgmr.msra.gmra.mrb[6].mxu1 %vm454_vm3, %v904_v59 }
 0xb21   : > { %3345 = vmatpush1.bf16.msra.mxu1 %v3855_v13  ;;  %1203 = vmatprep.mubr.f32.mxu1 %v3707_v7 }
 0xb22   : > { %3347 = vmatprep.subr.bf16.mxu1 %v3867_v17 }
 0xb25   : > { %3349 = vmatpush1.bf16.msra.mxu1 %v3873_v18 }
 0xbf3   : > { %v979_v61 = vpop.f32.mrb[6].mxu1 }
 0xbf4   : > { %v986_v63 = vadd.f32 %v984_v60, %v979_v61  ;;  %v981_v0 = vpop.f32.mrb[7].mxu1 }
 0xbf5   : > { %v989_v1 = vadd.f32 %v987_v62, %v981_v0 }
 0xbf7   : > { %v990_v2 = vsel %vm534_vm1, %v986_v63, %v989_v1 }
 0xbf8   : > { %3603 = vtanh.f32 %v990_v2  ;;  %v3072_v4 = vmul.f32 -1.442695, %v990_v2 }
 0xbfa   : > { %3605 = vpow2.f32 %v3072_v4  ;;  %v1321_v4 = vrot.slane %v3907_v30, 7 }
 0xc02   : > { %v3604_v3 = vpop.eup %3603 }
 0xc03   : > { %1000 = vrot.lane.b32.xlu0 %v3604_v3, %s4613_s20 }
 0xc04   : > { %v3606_v5 = vpop.eup %3605 }
 0xc05   : > { %v994_v9 = vadd.f32 1.0, %v3606_v5 }
 0xc07   : > { %3607 = vrcp.f32 %v994_v9  ;;  %v1324_v9 = vrot.slane %v3905_v29, 7 }
 0xc11   : > { %v3608_v10 = vpop.eup %3607 }
 0xc12   : > { %v998_v14 = vmul.f32 %v3608_v10, %v895_v55 }
 0xc75   : > { %v1001_v11 = vpop.permute.xlu0 %1000 }
 0xc76   : > { %v1003_v12 = vmul.f32 %v3608_v10, %v1001_v11 }
 0xc78   : > { %1005 = vrot.lane.b32.xlu1 %v1003_v12, %s4612_s21 }
 0xcea   : > { %v1006_v15 = vpop.permute.xlu1 %1005 }
 0xceb   : > { %v1008_v16 = vadd.f32 %v1006_v15, %v998_v14 }
 0xced   : > { %3609 = vtanh.f32 %v1008_v16 }
 0xcf7   : > { %v3610_v19 = vpop.eup %3609 }
 0xcf8   : > { %1011 = vrot.lane.b32.xlu0 %v3610_v19, %s4613_s20 }
 0xd6a   : > { %v1012_v20 = vpop.permute.xlu0 %1011 }
 0xd6b   : > { %v3982_v23 = vmul.f32 %v3608_v10, %v1012_v20 }
 0xd6d   : > { %1016 = vrot.lane.b32.xlu1 %v3982_v23, %s4612_s21 }
 0xddf   : > { %v3986_v25 = vpop.permute.xlu1 %1016 }
 0xde0   : > { %3073 = vmatmul.mubr.msk.f32.vlgmr.msra.gmra.mrb[4].mxu0 %vm454_vm3, %v3986_v25 }
 0xde1   : > { %3353 = vmatpush1.bf16.msra.mxu0 %v3855_v13  ;;  %1314 = vmatprep.mubr.f32.mxu0 %v3707_v7 }
 0xde2   : > { %3355 = vmatprep.subr.bf16.mxu0 %v3867_v17 }
 0xde5   : > { %3357 = vmatpush1.bf16.msra.mxu0 %v3873_v18 }
 0xde6   : > { %3238 = vmatprep.subr.mxu0 %v3707_v7 }
 0xeb3   : > { %v1092_v27 = vpop.f32.mrb[4].mxu0 }
 0xeb4   : > { %v1099_v31 = vadd.f32 %v1097_v26, %v1092_v27  ;;  %v1094_v32 = vpop.f32.mrb[5].mxu0 }
 0xeb5   : > { %v1102_v33 = vadd.f32 %v1100_v28, %v1094_v32 }
 0xeb7   : > { %v1103_v34 = vsel %vm534_vm1, %v1099_v31, %v1102_v33 }
 0xeb8   : > { %3611 = vtanh.f32 %v1103_v34  ;;  %v3074_v35 = vmul.f32 -1.442695, %v1103_v34  ;;  %v1365_v34 = vld [vmem:[%s4605_s4 + $0x18] sm:$0xff] }
 0xeba   : > { %3613 = vpow2.f32 %v3074_v35 }
 0xec2   : > { %v3612_v13 = vpop.eup %3611 }
 0xec3   : > { %1113 = vrot.lane.b32.xlu0 %v3612_v13, %s4613_s20  ;;  %v1362_v13 = vld [vmem:[%s4605_s4] sm:$0xff] }
 0xec4   : > { %v3614_v17 = vpop.eup %3613 }
 0xec5   : > { %v1107_v18 = vadd.f32 1.0, %v3614_v17  ;;  %v1364_v17 = vld [vmem:[%s4605_s4 + $0x10] sm:$0xff] }
 0xec7   : > { %3615 = vrcp.f32 %v1107_v18  ;;  %v1367_v18 = vld [vmem:[%s4605_s4 + $0x28] sm:$0xff] }
 0xed1   : > { %v3616_v36 = vpop.eup %3615 }
 0xed2   : > { %v1111_v40 = vmul.f32 %v3616_v36, %v1008_v16 }
 0xf35   : > { %v1114_v38 = vpop.permute.xlu0 %1113 }
 0xf36   : > { %v1116_v39 = vmul.f32 %v3616_v36, %v1114_v38  ;;  %v3360_v38 = vpack.c.bf16 %v1364_v17, %v1362_v13  ;;  %v3119_v13 = vld [vmem:[%s4607_s6 + $0xd0] sm:$0xff] }
 0xf37   : > { %v4178_v17 = vld [vmem:[#allocation3 + $0xa] sm:$0xff] }
 0xf38   : > { %1118 = vrot.lane.b32.xlu1 %v1116_v39, %s4612_s21 }
 0xfaa   : > { %v1119_v41 = vpop.permute.xlu1 %1118 }
 0xfab   : > { %v1121_v42 = vadd.f32 %v1119_v41, %v1111_v40  ;;  %v1366_v40 = vld [vmem:[%s4605_s4 + $0x20] sm:$0xff]  ;;  %v1368_v41 = vld [vmem:[%s4605_s4 + $0x30] sm:$0xff] }
 0xfad   : > { %3617 = vtanh.f32 %v1121_v42 }
 0xfb7   : > { %v3618_v43 = vpop.eup %3617 }
 0xfb8   : > { %1124 = vrot.lane.b32.xlu0 %v3618_v43, %s4613_s20  ;;  %v3364_v43 = vpack.c.bf16 %v1368_v41, %v1366_v40  ;;  %v4195_v41 = vld [vmem:[#allocation3 + $0xc] sm:$0xff] }
0x102a   : > { %v1125_v44 = vpop.permute.xlu0 %1124 }
0x102b   : > { %v4001_v45 = vmul.f32 %v3616_v36, %v1125_v44  ;;  %v1369_v36 = vld [vmem:[%s4605_s4 + $0x38] sm:$0xff]  ;;  %v1371_v44 = vld [vmem:[%s4605_s4 + $0x48] sm:$0xff] }
0x102c   : > { %v3362_v39 = vpack.c.bf16 %v1369_v36, %v1367_v18  ;;  %v4180_v18 = vld [vmem:[#allocation3 + $0x3] sm:$0xff] }
0x102d   : > { %1129 = vrot.lane.b32.xlu1 %v4001_v45, %s4612_s21 }
0x109f   : > { %v4005_v46 = vpop.permute.xlu1 %1129 }
0x10a0   : > { %3075 = vmatmul.mubr.msk.f32.vlgmr.msra.gmra.mrb[8].mxu1 %vm454_vm3, %v4005_v46 }
0x10a1   : > { %1458 = vmatprep.mubr.f32.mxu1 %v3707_v7 }
0x1173   : > { %v1205_v48 = vpop.f32.mrb[8].mxu1 }
0x1174   : > { %v1212_v50 = vadd.f32 %v1210_v47, %v1205_v48  ;;  %v1207_v8 = vpop.f32.mrb[9].mxu1 }
0x1175   : > { %v1213_v51 = vadd.f32 %v1207_v8, %v3905_v29  ;;  %v1374_v8 = vld [vmem:[%s4605_s4 + $0x60] sm:$0xff] }
0x1177   : > { %v1214_v52 = vsel %vm534_vm1, %v1212_v50, %v1213_v51  ;;  %v1377_v50 = vld [vmem:[%s4605_s4 + $0x78] sm:$0xff]  ;;  %v1376_v51 = vld [vmem:[%s4605_s4 + $0x70] sm:$0xff] }
0x1178   : > { %3619 = vtanh.f32 %v1214_v52  ;;  %v3076_v54 = vmul.f32 -1.442695, %v1214_v52 }
0x117a   : > { %3621 = vpow2.f32 %v3076_v54 }
0x1182   : > { %v3620_v53 = vpop.eup %3619 }
0x1183   : > { %1224 = vrot.lane.b32.xlu0 %v3620_v53, %s4613_s20  ;;  %v3372_v53 = vpack.c.bf16 %v1376_v51, %v1374_v8 }
0x1184   : > { %v3622_v55 = vpop.eup %3621 }
0x1185   : > { %v1218_v56 = vadd.f32 1.0, %v3622_v55 }
0x1187   : > { %3623 = vrcp.f32 %v1218_v56 }
0x1191   : > { %v3624_v57 = vpop.eup %3623 }
0x1192   : > { %v1222_v61 = vmul.f32 %v3624_v57, %v1121_v42 }
0x11f5   : > { %v1225_v59 = vpop.permute.xlu0 %1224 }
0x11f6   : > { %v1227_v60 = vmul.f32 %v3624_v57, %v1225_v59 }
0x11f8   : > { %1229 = vrot.lane.b32.xlu1 %v1227_v60, %s4612_s21 }
0x126a   : > { %v1230_v62 = vpop.permute.xlu1 %1229 }
0x126b   : > { %v1232_v63 = vadd.f32 %v1230_v62, %v1222_v61 }
0x126d   : > { %3625 = vtanh.f32 %v1232_v63 }
0x1277   : > { %v3626_v0 = vpop.eup %3625 }
0x1278   : > { %1235 = vrot.lane.b32.xlu0 %v3626_v0, %s4613_s20 }
0x12ea   : > { %v1236_v1 = vpop.permute.xlu0 %1235 }
0x12eb   : > { %v1238_v2 = vmul.f32 %v3624_v57, %v1236_v1 }
0x12ed   : > { %1240 = vrot.lane.b32.xlu1 %v1238_v2, %s4612_s21 }
0x135f   : > { %v4017_v3 = vpop.permute.xlu1 %1240 }
0x1360   : > { %3077 = vmatmul.mubr.msk.f32.vlgmr.msra.gmra.mrb[6].mxu0 %vm454_vm3, %v4017_v3 }
0x1361   : > { %3240 = vmatprep.mubr.msk.f32.mxu0 %vm3710_vm6, %v3707_v7 }
0x1433   : > { %v1316_v5 = vpop.f32.mrb[6].mxu0 }
0x1434   : > { %v1323_v10 = vadd.f32 %v1321_v4, %v1316_v5  ;;  %v1318_v11 = vpop.f32.mrb[7].mxu0 }
0x1435   : > { %v1326_v12 = vadd.f32 %v1324_v9, %v1318_v11 }
0x1437   : > { %v1327_v14 = vsel %vm534_vm1, %v1323_v10, %v1326_v12  ;;  %v3711_v12 = vmov 64  }
0x1438   : > { %3627 = vtanh.f32 %v1327_v14  ;;  %v3078_v16 = vmul.f32 -1.442695, %v1327_v14  ;;  %3560 = vset.pattern.permute.xlu0 %v3711_v12  ;;  %v3085_v14 = vld [vmem:[%s4607_s6 + $0x40] sm:$0xff]  ;;  %v3083_v12 = vld [vmem:[%s4607_s6 + $0x30] sm:$0xff] }
0x143a   : > { %3629 = vpow2.f32 %v3078_v16  ;;  %v4133_v16 = vld [vmem:[#allocation3 + $0x1] sm:$0xff] }
0x1442   : > { %v3628_v15 = vpop.eup %3627 }
0x1443   : > { %1337 = vrot.lane.b32.xlu0 %v3628_v15, %s4613_s20  ;;  %v3088_v15 = vld [vmem:[%s4607_s6 + $0x58] sm:$0xff] }
0x1444   : > { %v3630_v19 = vpop.eup %3629 }
0x1445   : > { %v1331_v20 = vadd.f32 1.0, %v3630_v19  ;;  %v3378_v19 = vpack.c.bf16 %v3088_v15, %v3085_v14  ;;  %v3086_v14 = vld [vmem:[%s4607_s6 + $0x48] sm:$0xff] }
0x1446   : > { %v1675_v15 = vld [vmem:[%s4607_s6 + $0x8] sm:$0xff] }
0x1447   : > { %3631 = vrcp.f32 %v1331_v20  ;;  %v1676_v20 = vld [vmem:[%s4607_s6 + $0x10] sm:$0xff] }
0x1451   : > { %v3632_v26 = vpop.eup %3631 }
0x1452   : > { %v1335_v29 = vmul.f32 %v3632_v26, %v1232_v63 }
0x14b5   : > { %v1338_v27 = vpop.permute.xlu0 %1337 }
0x14b6   : > { %v1340_v30 = vmul.f32 %v3632_v26, %v1338_v27 }
0x14b8   : > { %1342 = vrot.lane.b32.xlu1 %v1340_v30, %s4612_s21  ;;  %v3099_v30 = vld [vmem:[%s4607_s6 + $0x70] sm:$0xff] }
0x14bc   : > { %566 = vrot.lane.b32.xlu1 %v3915_v49, %s4613_s20 }
0x14c0   : > { %794 = vrot.lane.b32.xlu1 %v3949_v37, %s4613_s20 }
0x14c4   : > { %1020 = vrot.lane.b32.xlu1 %v3982_v23, %s4613_s20  ;;  %v1363_v23 = vld [vmem:[%s4605_s4 + $0x8] sm:$0xff] }
0x14c5   : > { %v3358_v35 = vpack.c.bf16 %v1365_v34, %v1363_v23  ;;  %v4166_v23 = vld [vmem:[#allocation3 + $0x2] sm:$0xff] }
0x14c7   : > { %3359 = vmatprep.subr.bf16.mxu1 %v3358_v35  ;;  %v3122_v35 = vld [vmem:[%s4607_s6 + $0xe8] sm:$0xff] }
0x14c8   : > { %1244 = vrot.lane.b32.xlu1 %v1238_v2, %s4613_s20  ;;  %3361 = vmatpush1.bf16.msra.mxu1 %v3360_v38  ;;  %v3410_v36 = vpack.c.bf16 %v3122_v35, %v3119_v13  ;;  %v4186_v38 = vld [vmem:[#allocation3 + $0xb] sm:$0xff]  ;;  %v3097_v35 = vld [vmem:[%s4607_s6 + $0x60] sm:$0xff] }
0x14c9   : > { %3363 = vmatprep.subr.bf16.mxu1 %v3362_v39  ;;  %v4188_v39 = vld [vmem:[#allocation3 + $0x4] sm:$0xff] }
0x14cc   : > { %3365 = vmatpush1.bf16.msra.mxu1 %v3364_v43 }
0x152a   : > { %v1343_v28 = vpop.permute.xlu1 %1342 }
0x152b   : > { %v1345_v31 = vadd.f32 %v1343_v28, %v1335_v29  ;;  %v3102_v29 = vld [vmem:[%s4607_s6 + $0x88] sm:$0xff] }
0x152c   : > { %v4150_v28 = vld [vmem:[#allocation3] sm:$0xff] }
0x152d   : > { %3633 = vtanh.f32 %v1345_v31  ;;  %v3394_v31 = vpack.c.bf16 %v3102_v29, %v3099_v30  ;;  %v1674_v29 = vld [vmem:[%s4607_s6] sm:$0xff] }
0x152e   : > { %v567_v32 = vpop.permute.xlu1 %566 }
0x152f   : > { %570 = vst.msk [vmem:[#allocation2 + $0x6] sm:$0x2] %vm569_vm4, %v567_v32  ;;  %v4152_v32 = vld [vmem:[#allocation3 + $0x9] sm:$0xff] }
0x1532   : > { %v795_v33 = vpop.permute.xlu1 %794 }
0x1533   : > { %797 = vst.msk [vmem:[#allocation2 + $0x4] sm:$0x2] %vm569_vm4, %v795_v33  ;;  %v3109_v33 = vld [vmem:[%s4607_s6 + $0xa0] sm:$0xff] }
0x1534   : > { %1132 = vst.msk [vmem:[#allocation2 + $0x5] sm:$0x1] %vm564_vm2, %v4005_v46  ;;  %v1373_v46 = vld [vmem:[%s4605_s4 + $0x58] sm:$0xff] }
0x1535   : > { %v3366_v47 = vpack.c.bf16 %v1373_v46, %v1371_v44 }
0x1536   : > { %v1021_v49 = vpop.permute.xlu1 %1020 }
0x1537   : > { %v3634_v37 = vpop.eup %3633  ;;  %1023 = vst.msk [vmem:[#allocation2 + $0x2] sm:$0x2] %vm569_vm4, %v1021_v49  ;;  %3367 = vmatprep.subr.bf16.mxu1 %v3366_v47  ;;  %v3112_v49 = vld [vmem:[%s4607_s6 + $0xb8] sm:$0xff] }
0x1538   : > { %1348 = vrot.lane.b32.xlu0 %v3634_v37, %s4613_s20  ;;  %v4164_v37 = vld [vmem:[#allocation3 + $0x8] sm:$0xff]  ;;  %v3402_v34 = vpack.c.bf16 %v3112_v49, %v3109_v33  ;;  %v3098_v33 = vld [vmem:[%s4607_s6 + $0x68] sm:$0xff]  ;;  %v3101_v49 = vld [vmem:[%s4607_s6 + $0x80] sm:$0xff] }
0x1539   : > { %v3390_v13 = vpack.c.bf16 %v3101_v49, %v3098_v33  ;;  %v2788_v33 = vld [vmem:[%s4609_s8 + $0x28] sm:$0xff] }
0x153a   : > { %v1245_v42 = vpop.permute.xlu1 %1244 }
0x153b   : > { %1247 = vst.msk [vmem:[#allocation2] sm:$0x2] %vm569_vm4, %v1245_v42 }
0x153c   : > { %681 = vrot.lane.b32.xlu0 %v3932_v6, %s4613_s20  ;;  %v1370_v6 = vld [vmem:[%s4605_s4 + $0x40] sm:$0xff] }
0x1540   : > { %907 = vrot.lane.b32.xlu0 %v3966_v58, %s4613_s20  ;;  %v1372_v58 = vld [vmem:[%s4605_s4 + $0x50] sm:$0xff] }
0x1541   : > { %v3368_v48 = vpack.c.bf16 %v1372_v58, %v1370_v6 }
0x1543   : > { %3369 = vmatpush1.bf16.msra.mxu1 %v3368_v48 }
0x1544   : > { %1133 = vrot.lane.b32.xlu0 %v4001_v45, %s4613_s20  ;;  %v1375_v45 = vld [vmem:[%s4605_s4 + $0x68] sm:$0xff] }
0x1545   : > { %v3370_v52 = vpack.c.bf16 %v1377_v50, %v1375_v45 }
0x1547   : > { %3371 = vmatprep.subr.bf16.mxu1 %v3370_v52 }
0x1548   : > { %3373 = vmatpush1.bf16.msra.mxu1 %v3372_v53 }
0x1549   : > { %3379 = vmatprep.subr.bf16.mxu1 %v3378_v19 }
0x15aa   : > { %v1349_v54 = vpop.permute.xlu0 %1348 }
0x15ab   : > { %v1351_v55 = vmul.f32 %v3632_v26, %v1349_v54  ;;  %v1679_v26 = vld [vmem:[%s4607_s6 + $0x28] sm:$0xff] }
0x15ac   : > { %v3386_v27 = vpack.c.bf16 %v1679_v26, %v1676_v20  ;;  %v3376_v26 = vpack.c.bf16 %v3086_v14, %v3083_v12  ;;  %v2815_v12 = vld [vmem:[%s4609_s8 + $0x100] sm:$0xff]  ;;  %v2816_v14 = vld [vmem:[%s4609_s8 + $0x108] sm:$0xff] }
0x15ad   : > { %1357 = vrot.lane.b32.xlu1 %v1351_v55, %s4619_s26  ;;  %1353 = vrot.lane.b32.xlu0 %v1351_v55, %s4620_s27  ;;  %s4559_s27 = scalar_lea.hbm %s4611_s10, %s3137_s0 }
0x15ae   : > { %v682_v56 = vpop.permute.xlu0 %681 }
0x15af   : > { %684 = vst.msk [vmem:[#allocation2 + $0x5] sm:$0x2] %vm569_vm4, %v682_v56 }
0x15b0   : > { %1243 = vst.msk [vmem:[#allocation2 + $0x6] sm:$0x1] %vm564_vm2, %v4017_v3 }
0x15b2   : > { %v908_v57 = vpop.permute.xlu0 %907 }
0x15b3   : > { %910 = vst.msk [vmem:[#allocation2 + $0x3] sm:$0x2] %vm569_vm4, %v908_v57 }
0x15b4   : > { %1019 = vst.msk [vmem:[#allocation2 + $0x4] sm:$0x1] %vm564_vm2, %v3986_v25  ;;  %v1378_v25 = vld [vmem:[%s4606_s5] sm:$0x3] }
0x15b5   : > { %v1383_v63 = vrot.slane %v1378_v25, %v3901_v24  ;;  %v1387_v3 = vrot.slane %v1378_v25, %v3895_v22  ;;  %v3129_v25 = vld [vmem:[%s4607_s6 + $0x100] sm:$0xff] }
0x15b6   : > { %v1134_v59 = vpop.permute.xlu0 %1133 }
0x15b7   : > { %1136 = vst.msk [vmem:[#allocation2 + $0x1] sm:$0x2] %vm569_vm4, %v1134_v59 }
0x161f   : > { %v1358_v60 = vpop.permute.xlu1 %1357  ;;  %v1354_v61 = vpop.permute.xlu0 %1353 }
0x1620   : > { %1360 = vst.msk [vmem:[#allocation2 - $0x1] sm:$0x2] %vm569_vm4, %v1358_v60 }
0x1621   : > { %1356 = vst.msk [vmem:[#allocation2 + $0x7] sm:$0x1] %vm564_vm2, %v1354_v61 }
0x1628   : > { %v4105_v62 = vld [vmem:[#allocation2] sm:$0xff] }
0x1629   : > { %3079 = vmatmul.mubr.msk.f32.vlgmr.msra.gmra.mrb[10].mxu1 %vm1390_vm5, %v4105_v62 }
0x162a   : > { %3252 = vmatprep.mubr.msk.f32.mxu1 %vm371_vm0, %v4133_v16  ;;  %3381 = vmatpush3.bf16.msra.mxu1 %v3378_v19  ;;  %v1678_v19 = vld [vmem:[%s4607_s6 + $0x20] sm:$0xff] }
0x162b   : > { %3387 = vmatprep.subr.bf16.mxu1 %v3386_v27  ;;  %v3382_v30 = vpack.c.bf16 %v1678_v19, %v1675_v15  ;;  %v3456_v19 = vpack.c.bf16 %v2816_v14, %v2815_v12 }
0x162d   : > { %3253 = vmatmul.mubr.msk.f32.vlgmr.msra.gmra.mrb[12].mxu1 %vm371_vm0, %v4152_v32 }
0x162e   : > { %3389 = vmatpush3.bf16.msra.mxu1 %v3386_v27  ;;  %3259 = vmatprep.mubr.msk.f32.mxu1 %vm371_vm0, %v4150_v28 }
0x162f   : > { %3395 = vmatprep.subr.bf16.mxu1 %v3394_v31 }
0x1635   : > { %3260 = vmatmul.mubr.msk.f32.vlgmr.msra.gmra.mrb[12].mxu1 %vm371_vm0, %v4164_v37 }
0x1636   : > { %3397 = vmatpush3.bf16.msra.mxu1 %v3394_v31  ;;  %3266 = vmatprep.mubr.msk.f32.mxu1 %vm371_vm0, %v4166_v23  ;;  %v1677_v31 = vld [vmem:[%s4607_s6 + $0x18] sm:$0xff] }
0x1637   : > { %3403 = vmatprep.subr.bf16.mxu1 %v3402_v34 }
0x163d   : > { %3267 = vmatmul.mubr.msk.f32.vlgmr.msra.gmra.mrb[12].mxu1 %vm371_vm0, %v4178_v17 }
0x163e   : > { %3405 = vmatpush3.bf16.msra.mxu1 %v3402_v34  ;;  %3273 = vmatprep.mubr.msk.f32.mxu1 %vm371_vm0, %v4180_v18  ;;  %v3384_v34 = vpack.c.bf16 %v1677_v31, %v1674_v29  ;;  %v2834_v29 = vld [vmem:[%s4609_s8 + $0x198] sm:$0xff]  ;;  %v2787_v31 = vld [vmem:[%s4609_s8 + $0x20] sm:$0xff] }
0x163f   : > { %3411 = vmatprep.subr.bf16.mxu1 %v3410_v36 }
0x1645   : > { %3274 = vmatmul.mubr.msk.f32.vlgmr.msra.gmra.mrb[12].mxu1 %vm371_vm0, %v4186_v38 }
0x1646   : > { %3413 = vmatpush3.bf16.msra.mxu1 %v3410_v36  ;;  %3280 = vmatprep.mubr.msk.f32.mxu1 %vm371_vm0, %v4188_v39  ;;  %v3100_v36 = vld [vmem:[%s4607_s6 + $0x78] sm:$0xff] }
0x164d   : > { %3281 = vmatmul.mubr.msk.f32.vlgmr.msra.gmra.mrb[12].mxu1 %vm371_vm0, %v4195_v41 }
0x16fc   : > { %v1460_v0 = vpop.f32.mrb[10].mxu1 }
0x16fd   : > { %v1461_v1 = vadd.f32 %v1460_v0, %v1383_v63  ;;  %v1462_v2 = vpop.f32.mrb[11].mxu1  ;;  %v3132_v63 = vld [vmem:[%s4607_s6 + $0x118] sm:$0xff] }
0x16fe   : > { %v4118_v5 = vadd.f32 %v1462_v2, %v1387_v3  ;;  %v4208_v3 = vld [vmem:[#allocation3 + $0x5] sm:$0xff] }
0x16ff   : > { %1499 = vrot.lane.b32.xlu0 %v1461_v1, %s4619_s26  ;;  %3287 = vmatprep.mubr.msk.f32.mxu1 %vm371_vm0, %v4208_v3 }
0x1700   : > { %v1466_v40 = vsel %vm1465_vm9, %v4118_v5, -inf }
0x1701   : > { %v1467_v42 = vrot.slane %v1466_v40, 4 }
0x1703   : > { %v1468_v43 = vmax.f32 %v1466_v40, %v1467_v42  ;;  %v3108_v40 = vld [vmem:[%s4607_s6 + $0x98] sm:$0xff]  ;;  %v3392_v42 = vpack.c.bf16 %v3100_v36, %v3097_v35  ;;  %v2805_v35 = vld [vmem:[%s4609_s8 + $0xb0] sm:$0xff] }
0x1705   : > { %v1469_v44 = vrot.slane %v1468_v43, 2 }
0x1707   : > { %v1470_v46 = vmax.f32 %v1468_v43, %v1469_v44  ;;  %v3107_v44 = vld [vmem:[%s4607_s6 + $0x90] sm:$0xff] }
0x1709   : > { %v1471_v47 = vrot.slane %v1470_v46, 1 }
0x170b   : > { %v1472_v6 = vmax.f32 %v1470_v46, %v1471_v47  ;;  %v3110_v46 = vld [vmem:[%s4607_s6 + $0xa8] sm:$0xff] }
0x170c   : > { %v3400_v47 = vpack.c.bf16 %v3110_v46, %v3107_v44  ;;  %v2789_v46 = vld [vmem:[%s4609_s8 + $0x30] sm:$0xff] }
0x170d   : > { %v1473_v58 = vsub.f32 %v4118_v5, %v1472_v6 }
0x170f   : > { %v1474_v45 = vmul.f32 1.442695, %v1473_v58  ;;  %v3117_v58 = vld [vmem:[%s4607_s6 + $0xc0] sm:$0xff] }
0x1711   : > { %3635 = vpow2.f32 %v1474_v45  ;;  %v3120_v45 = vld [vmem:[%s4607_s6 + $0xd8] sm:$0xff] }
0x171b   : > { %v3636_v48 = vpop.eup %3635 }
0x171c   : > { %v1476_v50 = vsel %vm1465_vm9, %v3636_v48, 0.0 }
0x171d   : > { %v1477_v8 = vrot.slane %v1476_v50, 4 }
0x171f   : > { %v1478_v54 = vadd.f32 %v1477_v8, %v1476_v50  ;;  %v3127_v8 = vld [vmem:[%s4607_s6 + $0xf0] sm:$0xff] }
0x1721   : > { %v1479_v55 = vrot.slane %v1478_v54, 2 }
0x1723   : > { %v1480_v56 = vadd.f32 %v1479_v55, %v1478_v54 }
0x1725   : > { %v1481_v59 = vrot.slane %v1480_v56, 1 }
0x1727   : > { %v1482_v61 = vadd.f32 %v1481_v59, %v1480_v56 }
0x1771   : > { %v1500_v4 = vpop.permute.xlu0 %1499 }
0x1772   : > { %3239 = vmatpush3.xpose.msk.msra.mxu0 %vm1390_vm5, %v1500_v4  ;;  %v4212_v4 = vld [vmem:[#allocation3 + $0xd] sm:$0xff] }
0x1773   : > { %3243 = vmatprep.subr.mxu0 %v3707_v7 }
0x1775   : > { %3241 = vmatmul.mubr.msk.f32.vlgmr.msra.gmra.mrb[8].mxu0 %vm1390_vm5, %v1461_v1  ;;  %v3418_v1 = vpack.c.bf16 %v3132_v63, %v3129_v25  ;;  %v2784_v63 = vld [vmem:[%s4609_s8 + $0x8] sm:$0xff] }
0x1776   : > { %3244 = vmatpush3.msra.mxu0 %v4118_v5  ;;  %3245 = vmatprep.mubr.msk.f32.mxu0 %vm3710_vm6, %v3707_v7  ;;  %v3084_v5 = vld [vmem:[%s4607_s6 + $0x38] sm:$0xff] }
0x1777   : > { %3419 = vmatprep.subr.bf16.mxu1 %v3418_v1 }
0x1778   : > { %3421 = vmatpush3.bf16.msra.mxu1 %v3418_v1  ;;  %v2802_v1 = vld [vmem:[%s4609_s8 + $0x98] sm:$0xff] }
0x177b   : > { %3288 = vmatmul.mubr.msk.f32.vlgmr.msra.gmra.mrb[12].mxu1 %vm371_vm0, %v4212_v4 }
0x1848   : > { %v4123_v9 = vpop.f32.mrb[8].mxu0 }
0x1849   : > { %v3242_v10 = vpop.f32.mrb[9].mxu0  ;;  %v1576_v11 = vsel %vm1575_vm7, %v4123_v9, -inf }
0x184a   : > { %1577 = vmax.xlane.f32.xlu1 %v1576_v11 }
0x18d7   : > { %v1578_v51 = vpop.xlane.xlu1 %1577 }
0x18d8   : > { %v1579_v52 = vsub.f32 %v4123_v9, %v1578_v51  ;;  %v3087_v9 = vld [vmem:[%s4607_s6 + $0x50] sm:$0xff]  ;;  %v3130_v51 = vld [vmem:[%s4607_s6 + $0x108] sm:$0xff] }
0x18d9   : > { %v3374_v10 = vpack.c.bf16 %v3087_v9, %v3084_v5  ;;  %v2832_v5 = vld [vmem:[%s4609_s8 + $0x188] sm:$0xff]  ;;  %v2785_v9 = vld [vmem:[%s4609_s8 + $0x10] sm:$0xff] }
0x18da   : > { %v1580_v53 = vmul.f32 1.442695, %v1579_v52  ;;  %v3289_v52 = vpop.f32.mrb[12].mxu1 }
0x18db   : > { %3375 = vmatprep.subr.bf16.mxu0 %v3374_v10  ;;  %v2682_v54 = vpop.f32.mrb[13].mxu1 }
0x18dc   : > { %3637 = vpow2.f32 %v1580_v53 }
0x18dd   : > { %3639 = vrcp.f32 %v1482_v61  ;;  %v2783_v61 = vld [vmem:[%s4609_s8] sm:$0xff] }
0x18e6   : > { %v3638_v57 = vpop.eup %3637 }
0x18e7   : > { %v1582_v60 = vsel %vm1575_vm7, %v3638_v57, 0.0  ;;  %v3640_v0 = vpop.eup %3639 }
0x18e8   : > { %1583 = vadd.xlane.f32.xlu0 %v1582_v60  ;;  %v1484_v2 = vmul.f32 %v3640_v0, %v3636_v48  ;;  %v3408_v48 = vpack.c.bf16 %v3120_v45, %v3117_v58  ;;  %v2799_v60 = vld [vmem:[%s4609_s8 + $0x80] sm:$0xff]  ;;  %v2801_v0 = vld [vmem:[%s4609_s8 + $0x90] sm:$0xff] }
0x18e9   : > { %v2807_v58 = vld [vmem:[%s4609_s8 + $0xc0] sm:$0xff] }
0x18fe   : > { %1487 = vperm.xlu0 %3560, %v1484_v2   ;;  %v3424_v2 = vpack.c.bf16 %v2784_v63, %v2783_v61  ;;  %v2842_v63 = vld [vmem:[%s4609_s8 + $0x1d8] sm:$0xff] }
0x1975   : > { %v1584_v11 = vpop.xlane.xlu0 %1583 }
0x1976   : > { %3641 = vrcp.f32 %v1584_v11  ;;  %v2786_v11 = vld [vmem:[%s4609_s8 + $0x18] sm:$0xff] }
0x1977   : > { %v3428_v15 = vpack.c.bf16 %v2786_v11, %v2785_v9  ;;  %v2826_v11 = vld [vmem:[%s4609_s8 + $0x158] sm:$0xff] }
0x1980   : > { %v3642_v20 = vpop.eup %3641 }
0x1981   : > { %v1586_v27 = vmul.f32 %v3642_v20, %v3638_v57  ;;  %v2803_v20 = vld [vmem:[%s4609_s8 + $0xa0] sm:$0xff] }
0x1983   : > { %3246 = vmatmul.mubr.msk.f32.vlgmr.msra.gmra.mrb[10].mxu0 %vm1575_vm7, %v1586_v27  ;;  %v2833_v27 = vld [vmem:[%s4609_s8 + $0x190] sm:$0xff] }
0x1984   : > { %3377 = vmatpush1.bf16.msra.mxu0 %v3376_v26  ;;  %1759 = vmatprep.mubr.f32.mxu0 %v3707_v7  ;;  %v2804_v26 = vld [vmem:[%s4609_s8 + $0xa8] sm:$0xff]  ;;  %v3458_v49 = vpack.c.bf16 %v2834_v29, %v2833_v27 }
0x1985   : > { %3383 = vmatprep.subr.bf16.mxu0 %v3382_v30  ;;  %v3430_v30 = vpack.c.bf16 %v2804_v26, %v2803_v20 }
0x1987   : > { %3089 = vmatmul.mubr.msk.f32.vlgmr.msra.gmra.mrb[12].mxu0 %vm371_vm0, %v4133_v16  ;;  %v3111_v16 = vld [vmem:[%s4607_s6 + $0xb0] sm:$0xff] }
0x1988   : > { %3385 = vmatpush1.bf16.msra.mxu0 %v3384_v34  ;;  %1765 = vmatprep.mubr.f32.mxu0 %v3707_v7  ;;  %v3398_v43 = vpack.c.bf16 %v3111_v16, %v3108_v40  ;;  %v2817_v34 = vld [vmem:[%s4609_s8 + $0x110] sm:$0xff]  ;;  %v2806_v40 = vld [vmem:[%s4609_s8 + $0xb8] sm:$0xff]  ;;  %v2835_v16 = vld [vmem:[%s4609_s8 + $0x1a0] sm:$0xff] }
0x1989   : > { %3391 = vmatprep.subr.bf16.mxu0 %v3390_v13  ;;  %v2818_v13 = vld [vmem:[%s4609_s8 + $0x118] sm:$0xff] }
0x198a   : > { %v3460_v36 = vpack.c.bf16 %v2818_v13, %v2817_v34 }
0x198b   : > { %3090 = vmatmul.mubr.msk.f32.gmra.mrb[14].mxu0 %vm371_vm0, %v4152_v32  ;;  %v3118_v32 = vld [vmem:[%s4607_s6 + $0xc8] sm:$0xff] }
0x198c   : > { %1917 = vmatprep.mubr.f32.mxu0 %v3707_v7 }
0x198f   : > { %3093 = vmatmul.mubr.msk.f32.vlgmr.msra.gmra.mrb[12].mxu0 %vm371_vm0, %v4150_v28  ;;  %v3121_v28 = vld [vmem:[%s4607_s6 + $0xe0] sm:$0xff] }
0x1990   : > { %3393 = vmatpush1.bf16.msra.mxu0 %v3392_v42  ;;  %1923 = vmatprep.mubr.f32.mxu0 %v3707_v7  ;;  %v3406_v6 = vpack.c.bf16 %v3121_v28, %v3118_v32  ;;  %v2836_v42 = vld [vmem:[%s4609_s8 + $0x1a8] sm:$0xff]  ;;  %v2819_v32 = vld [vmem:[%s4609_s8 + $0x120] sm:$0xff]  ;;  %v3434_v28 = vpack.c.bf16 %v2806_v40, %v2805_v35 }
0x1991   : > { %3399 = vmatprep.subr.bf16.mxu0 %v3398_v43  ;;  %v3432_v43 = vpack.c.bf16 %v2788_v33, %v2787_v31  ;;  %v3462_v44 = vpack.c.bf16 %v2836_v42, %v2835_v16 }
0x1993   : > { %3094 = vmatmul.mubr.msk.f32.gmra.mrb[14].mxu0 %vm371_vm0, %v4164_v37  ;;  %v3128_v37 = vld [vmem:[%s4607_s6 + $0xf8] sm:$0xff] }
0x1994   : > { %2084 = vmatprep.mubr.f32.mxu0 %v3707_v7 }
0x1997   : > { %3103 = vmatmul.mubr.msk.f32.vlgmr.msra.gmra.mrb[12].mxu0 %vm371_vm0, %v4166_v23  ;;  %v3131_v23 = vld [vmem:[%s4607_s6 + $0x110] sm:$0xff] }
0x1998   : > { %3401 = vmatpush1.bf16.msra.mxu0 %v3400_v47  ;;  %2090 = vmatprep.mubr.f32.mxu0 %v3707_v7  ;;  %v3414_v50 = vpack.c.bf16 %v3131_v23, %v3128_v37  ;;  %v2790_v47 = vld [vmem:[%s4609_s8 + $0x38] sm:$0xff]  ;;  %v2808_v37 = vld [vmem:[%s4609_s8 + $0xc8] sm:$0xff]  ;;  %v2837_v23 = vld [vmem:[%s4609_s8 + $0x1b0] sm:$0xff] }
0x1999   : > { %3407 = vmatprep.subr.bf16.mxu0 %v3406_v6  ;;  %v2820_v6 = vld [vmem:[%s4609_s8 + $0x128] sm:$0xff] }
0x199a   : > { %v3464_v45 = vpack.c.bf16 %v2820_v6, %v2819_v32 }
0x199b   : > { %3104 = vmatmul.mubr.msk.f32.gmra.mrb[14].mxu0 %vm371_vm0, %v4178_v17  ;;  %v3416_v17 = vpack.c.bf16 %v3130_v51, %v3127_v8  ;;  %v2821_v8 = vld [vmem:[%s4609_s8 + $0x130] sm:$0xff]  ;;  %v2822_v51 = vld [vmem:[%s4609_s8 + $0x138] sm:$0xff] }
0x199c   : > { %2257 = vmatprep.mubr.f32.mxu0 %v3707_v7 }
0x199f   : > { %3113 = vmatmul.mubr.msk.f32.vlgmr.msra.gmra.mrb[12].mxu0 %vm371_vm0, %v4180_v18  ;;  %v2709_v18 = vsub.s32 2, %v3892_v21 }
0x19a0   : > { %3409 = vmatpush1.bf16.msra.mxu0 %v3408_v48  ;;  %2263 = vmatprep.mubr.f32.mxu0 %v3707_v7  ;;  %v2838_v48 = vld [vmem:[%s4609_s8 + $0x1b8] sm:$0xff] }
0x19a1   : > { %3415 = vmatprep.subr.bf16.mxu0 %v3414_v50  ;;  %v3466_v50 = vpack.c.bf16 %v2838_v48, %v2837_v23 }
0x19a3   : > { %3114 = vmatmul.mubr.msk.f32.gmra.mrb[14].mxu0 %vm371_vm0, %v4186_v38  ;;  %v4329_v38 = vld [vmem:[%s4608_s7] sm:$0x7] }
0x19a4   : > { %2430 = vmatprep.mubr.f32.mxu0 %v3707_v7 }
0x19a7   : > { %3123 = vmatmul.mubr.msk.f32.vlgmr.msra.gmra.mrb[12].mxu0 %vm371_vm0, %v4188_v39  ;;  %v2710_v39 = vrot.slane %v4329_v38, %v2709_v18  ;;  %v2839_v18 = vld [vmem:[%s4609_s8 + $0x1c0] sm:$0xff] }
0x19a8   : > { %3417 = vmatpush1.bf16.msra.mxu0 %v3416_v17  ;;  %2436 = vmatprep.mubr.f32.mxu0 %v3707_v7  ;;  %v3436_v17 = vpack.c.bf16 %v2790_v47, %v2789_v46  ;;  %v2706_v47 = vrot.slane %v4329_v38, %v3895_v22 }
0x19a9   : > { %v2719_v53 = vadd.f32 %v3289_v52, %v2710_v39  ;;  %v2791_v52 = vld [vmem:[%s4609_s8 + $0x40] sm:$0xff] }
0x19ab   : > { %3124 = vmatmul.mubr.msk.f32.gmra.mrb[14].mxu0 %vm371_vm0, %v4195_v41  ;;  %v4333_v41 = vadd.s32 8, %v3892_v21  ;;  %v2725_v55 = vmax.f32 %v2719_v53, 0.0  ;;  %v2800_v21 = vld [vmem:[%s4609_s8 + $0x88] sm:$0xff] }
0x19ac   : > { %2603 = vmatprep.mubr.f32.mxu0 %v3707_v7  ;;  %v3422_v25 = vpack.c.bf16 %v2800_v21, %v2799_v60  ;;  %v2792_v53 = vld [vmem:[%s4609_s8 + $0x48] sm:$0xff]  ;;  %v2823_v60 = vld [vmem:[%s4609_s8 + $0x140] sm:$0xff] }
0x19ad   : > { %vm2730_vm10 = vcmp.lt.s32.totalorder %v4333_v41, 9  ;;  %v2824_v21 = vld [vmem:[%s4609_s8 + $0x148] sm:$0xff]  ;;  %v3440_v61 = vpack.c.bf16 %v2792_v53, %v2791_v52 }
0x19ae   : > { %v2740_v57 = vsel %vm2730_vm10, %v2725_v55, 0.0  ;;  %3423 = vmatprep.subr.bf16.mxu1 %v3422_v25  ;;  %v2809_v55 = vld [vmem:[%s4609_s8 + $0xd0] sm:$0xff]  ;;  %v2844_v41 = vld [vmem:[%s4609_s8 + $0x1e8] sm:$0xff] }
0x19af   : > { %3133 = vmatmul.mubr.msk.f32.vlgmr.msra.gmra.mrb[12].mxu0 %vm371_vm0, %v4208_v3  ;;  %v3426_v3 = vpack.c.bf16 %v2802_v1, %v2801_v0  ;;  %3425 = vmatpush3.bf16.msra.mxu1 %v3424_v2  ;;  %v2841_v25 = vld [vmem:[%s4609_s8 + $0x1d0] sm:$0xff]  ;;  %v2794_v2 = vld [vmem:[%s4609_s8 + $0x58] sm:$0xff] }
0x19b0   : > { %2609 = vmatprep.mubr.f32.mxu0 %v3707_v7  ;;  %v2716_v7 = vadd.f32 %v2710_v39, %v2682_v54  ;;  %v3438_v39 = vpack.c.bf16 %v2808_v37, %v2807_v58  ;;  %v2840_v54 = vld [vmem:[%s4609_s8 + $0x1c8] sm:$0xff]  ;;  %v2793_v1 = vld [vmem:[%s4609_s8 + $0x50] sm:$0xff]  ;;  %v3474_v9 = vpack.c.bf16 %v2842_v63, %v2841_v25  ;;  %v2827_v63 = vld [vmem:[%s4609_s8 + $0x160] sm:$0xff] }
0x19b1   : > { %3427 = vmatprep.subr.bf16.mxu1 %v3426_v3  ;;  %v3472_v3 = vpack.c.bf16 %v2824_v21, %v2823_v60  ;;  %v3444_v12 = vpack.c.bf16 %v2794_v2, %v2793_v1  ;;  %v2798_v60 = vld [vmem:[%s4609_s8 + $0x78] sm:$0xff] }
0x19b2   : > { %v2722_v56 = vmax.f32 %v2716_v7, 0.0  ;;  %v3468_v7 = vpack.c.bf16 %v2822_v51, %v2821_v8 }
0x19b3   : > { %3134 = vmatmul.mubr.msk.f32.gmra.mrb[14].mxu0 %vm371_vm0, %v4212_v4  ;;  %v2831_v4 = vld [vmem:[%s4609_s8 + $0x180] sm:$0xff]  ;;  %3429 = vmatpush3.bf16.msra.mxu1 %v3428_v15 }
0x19b4   : > { %v4338_v59 = vmax.f32 %v2722_v56, %v2740_v57  ;;  %v3454_v10 = vpack.c.bf16 %v2832_v5, %v2831_v4  ;;  %3431 = vmatprep.subr.bf16.mxu1 %v3430_v30  ;;  %v2810_v56 = vld [vmem:[%s4609_s8 + $0xd8] sm:$0xff]  ;;  %v3470_v57 = vpack.c.bf16 %v2840_v54, %v2839_v18  ;;  %v2811_v4 = vld [vmem:[%s4609_s8 + $0xe0] sm:$0xff]  ;;  %v2812_v5 = vld [vmem:[%s4609_s8 + $0xe8] sm:$0xff] }
0x19b5   : > { %v3442_v0 = vpack.c.bf16 %v2810_v56, %v2809_v55  ;;  %v3446_v14 = vpack.c.bf16 %v2812_v5, %v2811_v4  ;;  %v2795_v15 = vld [vmem:[%s4609_s8 + $0x60] sm:$0xff]  ;;  %v2814_v54 = vld [vmem:[%s4609_s8 + $0xf8] sm:$0xff]  ;;  %v2845_v4 = vld [vmem:[%s4609_s8 + $0x1f0] sm:$0xff] }
0x19b6   : > { %3455 = vmatprep.subr.bf16.mxu0 %v3454_v10  ;;  %v2825_v10 = vld [vmem:[%s4609_s8 + $0x150] sm:$0xff]  ;;  %v2756_v27 = vrot.slane %v4338_v59, 4  ;;  %v2846_v5 = vld [vmem:[%s4609_s8 + $0x1f8] sm:$0xff] }
0x19b7   : > { %3457 = vmatpush3.bf16.msra.mxu0 %v3456_v19  ;;  %3433 = vmatpush3.bf16.msra.mxu1 %v3432_v43  ;;  %v2796_v19 = vld [vmem:[%s4609_s8 + $0x68] sm:$0xff]  ;;  %v3476_v20 = vpack.c.bf16 %v2826_v11, %v2825_v10  ;;  %v3482_v10 = vpack.c.bf16 %v2846_v5, %v2845_v4  ;;  %v2829_v11 = vld [vmem:[%s4609_s8 + $0x170] sm:$0xff] }
0x19b8   : > { %3459 = vmatprep.subr.bf16.mxu0 %v3458_v49  ;;  %3435 = vmatprep.subr.bf16.mxu1 %v3434_v28  ;;  %v3448_v26 = vpack.c.bf16 %v2796_v19, %v2795_v15  ;;  %v2757_v30 = vmax.f32 %v4338_v59, %v2756_v27  ;;  %v2702_v28 = vrot.slane %v4329_v38, %v3901_v24  ;;  %v2813_v38 = vld [vmem:[%s4609_s8 + $0xf0] sm:$0xff] }
0x19b9   : > { %v3450_v56 = vpack.c.bf16 %v2814_v54, %v2813_v38 }
0x19ba   : > { %v2758_v29 = vrot.slane %v2757_v30, 2 }
0x19bb   : > { %3461 = vmatpush3.bf16.msra.mxu0 %v3460_v36  ;;  %3437 = vmatpush3.bf16.msra.mxu1 %v3436_v17 }
0x19bc   : > { %3463 = vmatprep.subr.bf16.mxu0 %v3462_v44  ;;  %3439 = vmatprep.subr.bf16.mxu1 %v3438_v39  ;;  %v2759_v34 = vmax.f32 %v2757_v30, %v2758_v29  ;;  %v1488_v29 = vpop.permute.xlu0 %1487 }
0x19be   : > { %v2760_v40 = vrot.slane %v2759_v34, 1 }
0x19bf   : > { %3465 = vmatpush3.bf16.msra.mxu0 %v3464_v45  ;;  %3441 = vmatpush3.bf16.msra.mxu1 %v3440_v61 }
0x19c0   : > { %3467 = vmatprep.subr.bf16.mxu0 %v3466_v50  ;;  %3443 = vmatprep.subr.bf16.mxu1 %v3442_v0  ;;  %v2761_v43 = vmax.f32 %v2759_v34, %v2760_v40  ;;  %v2828_v0 = vld [vmem:[%s4609_s8 + $0x168] sm:$0xff] }
0x19c1   : > { %v3480_v2 = vpack.c.bf16 %v2828_v0, %v2827_v63 }
0x19c3   : > { %3469 = vmatpush3.bf16.msra.mxu0 %v3468_v7  ;;  %3445 = vmatpush3.bf16.msra.mxu1 %v3444_v12  ;;  %v2843_v7 = vld [vmem:[%s4609_s8 + $0x1e0] sm:$0xff]  ;;  %v2830_v12 = vld [vmem:[%s4609_s8 + $0x178] sm:$0xff] }
0x19c4   : > { %3471 = vmatprep.subr.bf16.mxu0 %v3470_v57  ;;  %3447 = vmatprep.subr.bf16.mxu1 %v3446_v14  ;;  %v2797_v57 = vld [vmem:[%s4609_s8 + $0x70] sm:$0xff]  ;;  %v3478_v61 = vpack.c.bf16 %v2844_v41, %v2843_v7  ;;  %v3484_v15 = vpack.c.bf16 %v2830_v12, %v2829_v11 }
0x19c5   : > { %v3452_v25 = vpack.c.bf16 %v2798_v60, %v2797_v57 }
0x19c7   : > { %3473 = vmatpush3.bf16.msra.mxu0 %v3472_v3  ;;  %3449 = vmatpush3.bf16.msra.mxu1 %v3448_v26 }
0x19c8   : > { %3475 = vmatprep.subr.bf16.mxu0 %v3474_v9  ;;  %3451 = vmatprep.subr.bf16.mxu1 %v3450_v56 }
0x19cb   : > { %3477 = vmatpush3.bf16.msra.mxu0 %v3476_v20  ;;  %3453 = vmatpush3.bf16.msra.mxu1 %v3452_v25 }
0x19cc   : > { %3479 = vmatprep.subr.bf16.mxu0 %v3478_v61 }
0x19cf   : > { %3481 = vmatpush3.bf16.msra.mxu0 %v3480_v2 }
0x19d0   : > { %3483 = vmatprep.subr.bf16.mxu0 %v3482_v10 }
0x19d3   : > { %3485 = vmatpush3.bf16.msra.mxu0 %v3484_v15 }
0x1a56   : > { %v1656_v31 = vpop.f32.mrb[10].mxu0 }
0x1a57   : > { %v1660_v33 = vsel %vm1390_vm5, %v1656_v31, -inf  ;;  %v3247_v49 = vpop.f32.mrb[11].mxu0  ;;  %v1490_v31 = vmul.f32 %v1488_v29, %v4105_v62 }
0x1a58   : > { %v1661_v13 = vrot.slane %v1660_v33, 4 }
0x1a5a   : > { %v1662_v35 = vmax.f32 %v1660_v33, %v1661_v13  ;;  %v1491_v33 = vsel %vm1390_vm5, %v1490_v31, 0.0 }
0x1a5b   : > { %v1492_v49 = vrot.slane %v1491_v33, 4 }
0x1a5c   : > { %v1663_v36 = vrot.slane %v1662_v35, 2 }
0x1a5d   : > { %v1493_v34 = vadd.f32 %v1492_v49, %v1491_v33 }
0x1a5e   : > { %v1664_v16 = vmax.f32 %v1662_v35, %v1663_v36 }
0x1a5f   : > { %v1494_v13 = vrot.slane %v1493_v34, 2 }
0x1a60   : > { %v1665_v42 = vrot.slane %v1664_v16, 1 }
0x1a61   : > { %v1495_v35 = vadd.f32 %v1494_v13, %v1493_v34 }
0x1a62   : > { %v1666_v44 = vmax.f32 %v1664_v16, %v1665_v42 }
0x1a63   : > { %v1496_v36 = vrot.slane %v1495_v35, 1 }
0x1a64   : > { %v3566_v46 = vpack.i.bf16 %v1666_v44, %v2761_v43 }
0x1a65   : > { %v1497_v16 = vadd.f32 %v1496_v36, %v1495_v35 }
0x1a82   : > { %v2605_v32 = vpop.f32.mrb[12].mxu0 }
0x1a83   : > { %v2607_v59 = vpop.f32.mrb[13].mxu0  ;;  %v2714_v6 = vadd.f32 %v2702_v28, %v2605_v32 }
0x1a84   : > { %v2715_v45 = vadd.f32 %v2706_v47, %v2607_v59 }
0x1a85   : > { %v2720_v8 = vmax.f32 %v2714_v6, 0.0 }
0x1a86   : > { %v2611_v58 = vpop.f32.mrb[14].mxu0  ;;  %v2721_v17 = vmax.f32 %v2715_v45, 0.0 }
0x1a87   : > { %v2717_v37 = vadd.f32 %v2702_v28, %v2611_v58  ;;  %v2613_v23 = vpop.f32.mrb[15].mxu0 }
0x1a88   : > { %v2718_v48 = vadd.f32 %v2706_v47, %v2613_v23 }
0x1a89   : > { %v2723_v50 = vmax.f32 %v2717_v37, 0.0  ;;  %v2847_v37 = vld [vmem:[%s4610_s9] sm:$0x1] }
0x1a8a   : > { %v2724_v51 = vmax.f32 %v2718_v48, 0.0 }
0x1a8b   : > { %v2738_v18 = vsel %vm2730_vm10, %v2723_v50, 0.0 }
0x1a8c   : > { %v2741_v39 = vmax.f32 %v2720_v8, %v2738_v18  ;;  %v2739_v24 = vsel %vm2730_vm10, %v2724_v51, 0.0 }
0x1a8d   : > { %v2748_v52 = vmax.f32 %v2721_v17, %v2739_v24 }
0x1a8e   : > { %v2742_v53 = vrot.slane %v2741_v39, 4 }
0x1a8f   : > { %v2749_v22 = vrot.slane %v2748_v52, 4 }
0x1a90   : > { %v2743_v55 = vmax.f32 %v2741_v39, %v2742_v53 }
0x1a91   : > { %v2750_v21 = vmax.f32 %v2748_v52, %v2749_v22 }
0x1a92   : > { %v2744_v1 = vrot.slane %v2743_v55, 2 }
0x1a93   : > { %v2751_v3 = vrot.slane %v2750_v21, 2 }
0x1a94   : > { %v2745_v9 = vmax.f32 %v2743_v55, %v2744_v1 }
0x1a95   : > { %v2752_v14 = vmax.f32 %v2750_v21, %v2751_v3 }
0x1a96   : > { %v2746_v19 = vrot.slane %v2745_v9, 1 }
0x1a97   : > { %v2753_v20 = vrot.slane %v2752_v14, 1 }
0x1a98   : > { %v2747_v26 = vmax.f32 %v2745_v9, %v2746_v19 }
0x1a99   : > { %v2754_v27 = vmax.f32 %v2752_v14, %v2753_v20 }
0x1a9b   : > { %v3561_v30 = vpack.i.bf16 %v2754_v27, %v2747_v26 }
0x1a9d   : > { %3562 = vrot.lane.b32.xlu1 %v3561_v30, %s4619_s26 }
0x1aa1   : > { %3567 = vrot.lane.b32.xlu1 %v3566_v46, %s4619_s26  ;;  %s348_s26 = sand.u32 1, %s3697_s14  }
0x1aa2   : > { %s349_s12 = scalar_lea.vmem [#allocation4], %s348_s26  ;;  %s2991_s20 = scalar_lea.sflag [#allocation5], %s348_s26 }
0x1aa3   : > { %s3003_s30 = sshll.u32 %s349_s12, 4  ;;  %s4561_s30 = int_to_ptr.vmem [resolvable:$true] %s3003_s30 }
0x1aa4   : > { %s3643_s28 = scalar_lea.vmem %s4561_s30, 16  ;;  %p3650_p0 = scmp.lt.s32.totalorder %s4561_s30, %s3648_s29 }
0x1aa5   : > { %p3644_p11 = scmp.ne.s32.totalorder %s4561_s30, %s3643_s28  ;;  %p3651_p1 = scmp.lt.s32.totalorder %s3649_s11, %s3643_s28 }
0x1aa7   : > { %p3645_p12 = pnand %p3644_p11, %p3806_p5  ;;  %p3652_p2 = por %p3651_p1, %p3650_p0 }
0x1aa9   : > { %p3646_p13 = pneg %p3645_p12 }
0x1aab   : > { %p3653_p3 = pnand %p3652_p2, %p3646_p13 }
0x1b0f   : > { %v3563_v40 = vpop.permute.xlu1 %3562 }
0x1b10   : > { %v3565_v42 = vunpack.i.h.bf16 %v3563_v40  ;;  %v3564_v43 = vunpack.i.l.bf16 %v3563_v40 }
0x1b12   : > { %v2771_v44 = vsel %vm1390_vm5, %v3564_v43, %v3565_v42  ;;  %v2781_v32 = vsel %vm1390_vm5, %v1497_v16, %v3564_v43 }
0x1b13   : > { %v3568_v46 = vpop.permute.xlu1 %3567  ;;  %2912 = vmatprep.mubr.f32.mxu1 %v2771_v44 }
0x1b14   : > { %v3570_v62 = vunpack.i.h.bf16 %v3568_v46  ;;  %v3569_v28 = vunpack.i.l.bf16 %v3568_v46  ;;  %2913 = vmatmul.mubr.f32.vlgmr.msra.gmra.mrb[14].mxu1 %v2781_v32 }
0x1b16   : > { %v2772_v59 = vsel %vm1390_vm5, %v3565_v42, %v3569_v28  ;;  %v2782_v47 = vsel %vm1390_vm5, %v3569_v28, %v3570_v62 }
0x1b17   : > { %2982 = vmatprep.mubr.f32.mxu0 %v2782_v47 }
0x1b18   : > { %2983 = vmatmul.mubr.f32.vlgmr.msra.gmra.mrb[16].mxu0 %v2772_v59 }
0x1be7   : > { %v3200_v6 = vpop.f32.mrb[14].mxu1 }
0x1be8   : > { %v3201_v58 = vpop.f32.mrb[15].mxu1 }
0x1be9   : > { %v3202_v45 = vadd.f32 %v3201_v58, %v3200_v6 }
0x1beb   : > { %v3235_v23 = vpop.f32.mrb[16].mxu0  ;;  %v2915_v50 = vadd.f32 %v3202_v45, %v2847_v37 }
0x1bec   : > { %v3236_v48 = vpop.f32.mrb[17].mxu0 }
0x1bed   : > { %v3237_v8 = vadd.f32 %v3236_v48, %v3235_v23 }
0x1bef   : > { %v2985_v51 = vadd.f32 %v3237_v8, %v2915_v50 }
0x1bf1   : > { %2989 = vst.msk [vmem:[%s349_s12] sm:$0x1] %vm2988_vm11, %v2985_v51 }
0x1bf2   : > { %3656 = shalt.err (!%p3653_p3)
}
0x1bf3   : > { %s3657_s26 = scalar_lea.hbm %s4559_s27, 16  ;;  %s3661_s12 = scalar_lea.hbm %s4611_s10, 32 }
0x1bf4   : > { %p3658_p4 = scmp.ne.s32.totalorder %s4559_s27, %s3657_s26  ;;  %p3662_p9 = scmp.lt.u32.totalorder %s4559_s27, %s4611_s10 }
0x1bf5   : > { %p3663_p10 = scmp.lt.u32.totalorder %s3661_s12, %s3657_s26  ;;  %p3665_p12 = scmp.lt.u32.totalorder %s3657_s26, %s4559_s27 }
0x1bf6   : > { %p3659_p7 = pnand %p3658_p4, %p3806_p5 }
0x1bf7   : > { %p3664_p11 = por %p3663_p10, %p3662_p9 }
0x1bf8   : > { %p3660_p8 = pneg %p3659_p7 }
0x1bf9   : > { %p3666_p13 = por %p3665_p12, %p3664_p11 }
0x1bfb   : > { %p3667_p0 = pnand %p3666_p13, %p3660_p8 }
0x1bfd   : > { %3670 = shalt.err (!%p3667_p0)
}
0x1bfe   : > { %3516 = dma.vmem_to_hbm [thread:$0]  (%p3806_p5), %s4561_s30, 16, %s4559_s27, %s2991_s20  }
0x1bff PF: > { %p3522_p1 = scmp.ge.s32.totalorder %s3705_s16, 2  ;;  %s3015_s28 = sand.u32 1, %s3693_s13  }
0x1c00   : > { %s3016_s17 = scalar_lea.sflag [#allocation5], %s3015_s28 }
0x1c01   : > { %p3519_p2 = pnand %p3522_p1, %p3810_p6 }
0x1c03   : > { %3688 = dma.done.wait (!%p3519_p2), %s3016_s17, 16  }
0x1c04   : > { %3690 = vsyncadd (!%p3519_p2), %s3016_s17, 4294967280  ;;  %p20_p3 = scmp.ge.s32.totalorder %s3793_s19, 4   ;;  %s4621_s13 = smov %s3697_s14 }
0x1c05   : > { %s4622_s14 = smov %s3701_s15  ;;  %s4623_s15 = smov %s3804_s22 }
0x1c06   : > { %s4624_s16 = smov %s3793_s19  ;;  %22 = sbr.rel (!%p20_p3) target bundleno = 5 (0x5), region = 100 }
0x1c0d   :  { %3020 = vsyncpa [#allocation5], 1 }
0x1c0e   :  { %3022 = vsyncpa [#allocation5 + $0x1], 1 }

</bundles_post_ra>
